<compile_context>
chip_gen: v5e
topology: v5e:2x2
jax: 0.10.0
libtpu: 0.0.40
codegen_flags: <defaults>
</compile_context>

<pallas_src>
import jax
import jax.numpy as jnp
from jax import lax
from jax.experimental import pallas as pl
from jax.experimental.pallas import tpu as pltpu


# ---------------------------------------------------------------------------
# Kernels
# ---------------------------------------------------------------------------

def _mfpa_single_pass_kernel(xrgb_q_ref, x_kv_ref, x_res_ref, wa_ref, ba_ref,
                             wv_ref, bv_ref, lam_ref, out_ref):
    # Per grid step (b, qi):
    #   xrgb_q_ref : (C, TQ)  query-source tile (x_RGB pixels)
    #   x_kv_ref   : (C, N)   full key/value slab (resident in VMEM)
    #   x_res_ref  : (C, TQ)  residual tile (x at the query positions)
    #   wa_ref     : (C, C)   Wk^T @ Wq (fused query/key projection)
    #   ba_ref     : (C, 1)   Wk^T @ bq
    #   wv_ref     : (C, C)   Wv
    #   bv_ref     : (C, 1)   bv (applied once at finalize)
    #   lam_ref    : (1, 1)   SMEM scalar
    #   out_ref    : (C, TQ)
    a = lax.dot_general(wa_ref[...], xrgb_q_ref[...],
                        (((1,), (0,)), ((), ())),
                        preferred_element_type=jnp.float32) + ba_ref[...]
    a_b = a.astype(jnp.bfloat16)                                  # (C, TQ)
    xkv_b = x_kv_ref[...].astype(jnp.bfloat16)                    # (C, N)

    # energy^T[j, i] = a_i . x_j  -> keys on sublanes, queries lane-dense.
    e = lax.dot_general(xkv_b, a_b, (((0,), (0,)), ((), ())),
                        preferred_element_type=jnp.float32)       # (N, TQ)

    m = jnp.max(e, axis=0, keepdims=True)                         # (1, TQ)
    p = jnp.exp(e - m)                                            # (N, TQ)
    l = jnp.sum(p, axis=0, keepdims=True)                         # (1, TQ)

    # Value projection (bias folded into the finalize).
    v = lax.dot_general(wv_ref[...].astype(jnp.bfloat16), xkv_b,
                        (((1,), (0,)), ((), ())),
                        preferred_element_type=jnp.float32)       # (C, N)
    pv = lax.dot_general(v.astype(jnp.bfloat16), p.astype(jnp.bfloat16),
                         (((1,), (0,)), ((), ())),
                         preferred_element_type=jnp.float32)      # (C, TQ)

    lam = lam_ref[0, 0]
    scale = lam * pl.reciprocal(l)                                # exact
    out_ref[...] = pv * scale + lam * bv_ref[...] + x_res_ref[...]


def _mfpa_flash_kernel(xrgb_q_ref, x_kv_ref, x_res_ref, wa_ref, ba_ref,
                       wv_ref, bv_ref, lam_ref, out_ref,
                       a_ref, m_ref, l_ref, acc_ref):
    # Per grid step (b, qi, ki):
    #   xrgb_q_ref : (C, TQ), x_kv_ref : (C, TK), x_res_ref : (C, TQ)
    # Scratch persists across the KV axis:
    #   a_ref (C, TQ) f32, m_ref/l_ref (1, TQ) f32, acc_ref (C, TQ) f32
    ki = pl.program_id(2)

    @pl.when(ki == 0)
    def _():
        a_ref[...] = lax.dot_general(
            wa_ref[...], xrgb_q_ref[...], (((1,), (0,)), ((), ())),
            preferred_element_type=jnp.float32) + ba_ref[...]
        m_ref[...] = jnp.full_like(m_ref, -jnp.inf)
        l_ref[...] = jnp.zeros_like(l_ref)
        acc_ref[...] = jnp.zeros_like(acc_ref)

    xkv_b = x_kv_ref[...].astype(jnp.bfloat16)                    # (C, TK)

    e = lax.dot_general(xkv_b, a_ref[...].astype(jnp.bfloat16),
                        (((0,), (0,)), ((), ())),
                        preferred_element_type=jnp.float32)       # (TK, TQ)

    # Online softmax update (f32 on VPU/EUP).
    m_prev = m_ref[...]
    m_new = jnp.maximum(m_prev, jnp.max(e, axis=0, keepdims=True))
    alpha = jnp.exp(m_prev - m_new)                               # (1, TQ)
    p = jnp.exp(e - m_new)                                        # (TK, TQ)
    l_ref[...] = alpha * l_ref[...] + jnp.sum(p, axis=0, keepdims=True)
    m_ref[...] = m_new

    # Value projection of this KV tile (no bias here; bf16 MXU, f32 accum).
    v = lax.dot_general(wv_ref[...].astype(jnp.bfloat16), xkv_b,
                        (((1,), (0,)), ((), ())),
                        preferred_element_type=jnp.float32)       # (C, TK)
    pv = lax.dot_general(v.astype(jnp.bfloat16), p.astype(jnp.bfloat16),
                         (((1,), (0,)), ((), ())),
                         preferred_element_type=jnp.float32)      # (C, TQ)
    acc_ref[...] = alpha * acc_ref[...] + pv

    @pl.when(ki == pl.num_programs(2) - 1)
    def _():
        lam = lam_ref[0, 0]
        scale = lam * pl.reciprocal(l_ref[...])                   # exact
        out_ref[...] = acc_ref[...] * scale + lam * bv_ref[...] + x_res_ref[...]


# ---------------------------------------------------------------------------
# Wrapper
# ---------------------------------------------------------------------------

def _device_generation():
    try:
        kind = jax.devices()[0].device_kind.lower()
    except Exception:
        kind = ""
    if "v5" in kind:
        return "v5e"
    if "v6" in kind:
        return "v6e"
    if "v7" in kind:
        return "v7x"
    return "unknown"


def _pick_tile(n, target):
    """Largest multiple of 128 that divides n and is <= target, else n."""
    best = None
    t = 128
    limit = min(n, max(target, 128))
    while t <= limit:
        if n % t == 0:
            best = t
        t += 128
    if best is not None:
        return best
    # TODO(synk): pad N to a multiple of 128 (with key masking) instead of
    # falling back to a full-extent tile for awkward N (e.g. H=W=63).
    return n


def _ensure_parallel_split(n, tq_eff, batch, gen):
    """Keep >= 2 parallel grid iterations on v7x (2 TensorCores per chip)."""
    if gen != "v7x":
        return tq_eff
    while (batch * (n // tq_eff) < 2 and tq_eff % 256 == 0
           and n % (tq_eff // 2) == 0):
        tq_eff //= 2
    return tq_eff


def mfpa_forward(x, x_rgb, params, *, tq=None, tk=None, single_pass_max_n=2048):
    """x, x_rgb: (B, C, H, W) float32 (NCHW, like the PyTorch module)."""
    B, C, H, W = x.shape
    N = H * W

    gen = _device_generation()
    if tq is None:
        tq = {"v5e": 256, "v6e": 512, "v7x": 512}.get(gen, 256)
    if tk is None:
        tk = {"v5e": 256, "v6e": 256, "v7x": 256}.get(gen, 256)

    # Channel-major, lane-dense layout: pure reshape, no transpose needed.
    x_cn = x.reshape(B, C, N)
    xrgb_cn = x_rgb.reshape(B, C, N)

    # Fold the query/key 1x1 convs into a single C-wide contraction.
    wa = (params["wk"].T @ params["wq"]).astype(jnp.float32)          # (C, C)
    ba = (params["wk"].T @ params["bq"]).reshape(C, 1).astype(jnp.float32)
    wv = params["wv"].astype(jnp.float32)                             # (C, C)
    bv = params["bv"].reshape(C, 1).astype(jnp.float32)
    lam = params["lam"].reshape(1, 1).astype(jnp.float32)

    vmem_limit = 32 * 1024 * 1024  # stay within v7x's 64 MiB physical VMEM

    if N <= single_pass_max_n:
        # --- Single-pass path: whole KV slab resident, softmax in one shot ---
        # Cap TQ so the (N, TQ) f32 softmax intermediate stays ~<= 4 MiB.
        tq_cap = max(128, ((1 << 20) // max(N, 1)) // 128 * 128)
        tq_eff = _pick_tile(N, min(tq, tq_cap))
        tq_eff = _ensure_parallel_split(N, tq_eff, B, gen)

        grid = (B, N // tq_eff)
        out_cn = pl.pallas_call(
            _mfpa_single_pass_kernel,
            out_shape=jax.ShapeDtypeStruct((B, C, N), jnp.float32),
            grid_spec=pltpu.PrefetchScalarGridSpec(
                num_scalar_prefetch=0,
                grid=grid,
                in_specs=[
                    pl.BlockSpec((None, C, tq_eff), lambda b, qi: (b, 0, qi)),
                    pl.BlockSpec((None, C, N), lambda b, qi: (b, 0, 0)),   # KV slab
                    pl.BlockSpec((None, C, tq_eff), lambda b, qi: (b, 0, qi)),
                    pl.BlockSpec((C, C), lambda b, qi: (0, 0)),            # Wa
                    pl.BlockSpec((C, 1), lambda b, qi: (0, 0)),            # ba
                    pl.BlockSpec((C, C), lambda b, qi: (0, 0)),            # Wv
                    pl.BlockSpec((C, 1), lambda b, qi: (0, 0)),            # bv
                    pl.BlockSpec(memory_space=pltpu.MemorySpace.SMEM),     # lam
                ],
                out_specs=pl.BlockSpec((None, C, tq_eff),
                                       lambda b, qi: (b, 0, qi)),
            ),
            compiler_params=pltpu.CompilerParams(
                dimension_semantics=("parallel", "parallel"),
                vmem_limit_bytes=vmem_limit,
            ),
        )(xrgb_cn, x_cn, x_cn, wa, ba, wv, bv, lam)
        return out_cn.reshape(B, C, H, W)

    # --- Flash path: online softmax over a tiled KV sweep (large N) ---
    tq_eff = _pick_tile(N, tq)
    tk_eff = _pick_tile(N, tk)
    tq_eff = _ensure_parallel_split(N, tq_eff, B, gen)

    grid = (B, N // tq_eff, N // tk_eff)
    out_cn = pl.pallas_call(
        _mfpa_flash_kernel,
        out_shape=jax.ShapeDtypeStruct((B, C, N), jnp.float32),
        grid_spec=pltpu.PrefetchScalarGridSpec(
            num_scalar_prefetch=0,
            grid=grid,
            in_specs=[
                pl.BlockSpec((None, C, tq_eff), lambda b, qi, ki: (b, 0, qi)),
                pl.BlockSpec((None, C, tk_eff), lambda b, qi, ki: (b, 0, ki)),
                pl.BlockSpec((None, C, tq_eff), lambda b, qi, ki: (b, 0, qi)),
                pl.BlockSpec((C, C), lambda b, qi, ki: (0, 0)),            # Wa
                pl.BlockSpec((C, 1), lambda b, qi, ki: (0, 0)),            # ba
                pl.BlockSpec((C, C), lambda b, qi, ki: (0, 0)),            # Wv
                pl.BlockSpec((C, 1), lambda b, qi, ki: (0, 0)),            # bv
                pl.BlockSpec(memory_space=pltpu.MemorySpace.SMEM),         # lam
            ],
            out_specs=pl.BlockSpec((None, C, tq_eff),
                                   lambda b, qi, ki: (b, 0, qi)),
            scratch_shapes=[
                pltpu.VMEM((C, tq_eff), jnp.float32),   # fused query proj. a
                pltpu.VMEM((1, tq_eff), jnp.float32),   # running max m
                pltpu.VMEM((1, tq_eff), jnp.float32),   # running sum l
                pltpu.VMEM((C, tq_eff), jnp.float32),   # output accumulator
            ],
        ),
        compiler_params=pltpu.CompilerParams(
            dimension_semantics=("parallel", "parallel", "arbitrary"),
            vmem_limit_bytes=vmem_limit,
        ),
    )(xrgb_cn, x_cn, x_cn, wa, ba, wv, bv, lam)
    return out_cn.reshape(B, C, H, W)


# ---------------------------------------------------------------------------
# Plain-JAX reference (mirrors the PyTorch forward) and demo
# ---------------------------------------------------------------------------

def mfpa_reference(x, x_rgb, params):
    B, C, H, W = x.shape
    N = H * W

    def conv1x1(inp, w, b):
        return jnp.einsum("bchw,oc->bohw", inp, w) + b[None, :, None, None]

    q = conv1x1(x_rgb, params["wq"], params["bq"]).reshape(B, -1, N).transpose(0, 2, 1)
    k = conv1x1(x, params["wk"], params["bk"]).reshape(B, -1, N)
    energy = jnp.einsum("bnc,bcm->bnm", q, k)
    attn = jax.nn.softmax(energy, axis=-1)
    v = conv1x1(x, params["wv"], params["bv"]).reshape(B, -1, N)
    out = jnp.einsum("bcj,bij->bci", v, attn).reshape(B, C, H, W)
    return params["lam"].reshape(()) * out + x


if __name__ == "__main__":
    B, C, H, W = 2, 8, 16, 16       # in_dim = 8 -> query/key channels = 2
    Cq = C // 4

    key = jax.random.PRNGKey(0)
    keys = jax.random.split(key, 9)
    x = jax.random.normal(keys[0], (B, C, H, W), jnp.float32)
    x_rgb = jax.random.normal(keys[1], (B, C, H, W), jnp.float32)

    # Conv2d 1x1 weights as (out, in) matrices.  nn.Parameter(torch.zeros(1))
    # initializes lam to 0; use a nonzero value so the attention path matters.
    params = dict(
        wq=jax.random.normal(keys[2], (Cq, C), jnp.float32) * 0.1,
        bq=jax.random.normal(keys[3], (Cq,), jnp.float32) * 0.1,
        wk=jax.random.normal(keys[4], (Cq, C), jnp.float32) * 0.1,
        bk=jax.random.normal(keys[5], (Cq,), jnp.float32) * 0.1,
        wv=jax.random.normal(keys[6], (C, C), jnp.float32) * 0.1,
        bv=jax.random.normal(keys[7], (C,), jnp.float32) * 0.1,
        lam=jnp.full((1,), 0.5, jnp.float32),
    )

    ref = mfpa_reference(x, x_rgb, params)

    # Single-pass path (the one the demo N=256 actually uses in production).
    out_sp = mfpa_forward(x, x_rgb, params)
    jax.block_until_ready(out_sp)
    err_sp = float(jnp.max(jnp.abs(out_sp - ref)))
    assert out_sp.shape == (B, C, H, W)
    assert err_sp < 1e-2, f"single-pass max abs error {err_sp}"

    # Flash path (forced) — exercises the online-softmax kernel with 2 KV steps.
    out_fl = mfpa_forward(x, x_rgb, params, tq=128, tk=128, single_pass_max_n=0)
    jax.block_until_ready(out_fl)
    err_fl = float(jnp.max(jnp.abs(out_fl - ref)))
    assert out_fl.shape == (B, C, H, W)
    assert err_fl < 1e-2, f"flash max abs error {err_fl}"

    print("KERNEL_OK")
</pallas_src>

<mosaic_0001>
module attributes {stable_mosaic.version = 11 : i64} {
  func.func @_mfpa_single_pass_kernel(%arg0: i32, %arg1: i32, %arg2: memref<1x8x256xf32, #tpu.memory_space<vmem>>, %arg3: memref<1x8x256xf32, #tpu.memory_space<vmem>>, %arg4: memref<1x8x256xf32, #tpu.memory_space<vmem>>, %arg5: memref<8x8xf32, #tpu.memory_space<vmem>>, %arg6: memref<8x1xf32, #tpu.memory_space<vmem>>, %arg7: memref<8x8xf32, #tpu.memory_space<vmem>>, %arg8: memref<8x1xf32, #tpu.memory_space<vmem>>, %arg9: memref<1x1xf32, #tpu.memory_space<smem>>, %arg10: memref<1x8x256xf32, #tpu.memory_space<vmem>>) attributes {dimension_semantics = [#tpu.dimension_semantics<parallel>, #tpu.dimension_semantics<parallel>], iteration_bounds = array<i64: 2, 1>, scalar_prefetch = 0 : i64, scratch_operands = 0 : i64, tpu.core_type = #tpu.core_type<tc>, window_params = [{transform_indices = @transform_0, window_bounds = array<i64: 1, 8, 256>}, {transform_indices = @transform_1, window_bounds = array<i64: 1, 8, 256>}, {transform_indices = @transform_2, window_bounds = array<i64: 1, 8, 256>}, {pipeline_mode = #tpu.pipeline_mode<synchronous>, transform_indices = @transform_3, window_bounds = array<i64: 8, 8>}, {pipeline_mode = #tpu.pipeline_mode<synchronous>, transform_indices = @transform_4, window_bounds = array<i64: 8, 1>}, {pipeline_mode = #tpu.pipeline_mode<synchronous>, transform_indices = @transform_5, window_bounds = array<i64: 8, 8>}, {pipeline_mode = #tpu.pipeline_mode<synchronous>, transform_indices = @transform_6, window_bounds = array<i64: 8, 1>}, {transform_indices = @transform_7, window_bounds = array<i64: 1, 1>}, {transform_indices = @transform_8, window_bounds = array<i64: 1, 8, 256>}]} {
    %c0 = arith.constant 0 : index
    %c0_0 = arith.constant 0 : index
    %0 = vector.load %arg5[%c0, %c0_0] : memref<8x8xf32, #tpu.memory_space<vmem>>, vector<8x8xf32>
    %c0_1 = arith.constant 0 : index
    %c0_2 = arith.constant 0 : index
    %c0_3 = arith.constant 0 : index
    %1 = vector.load %arg2[%c0_1, %c0_2, %c0_3] : memref<1x8x256xf32, #tpu.memory_space<vmem>>, vector<1x8x256xf32>
    %2 = vector.shape_cast %1 : vector<1x8x256xf32> to vector<8x256xf32>
    %cst = arith.constant dense<0.000000e+00> : vector<8x256xf32>
    %3 = tpu.matmul %0, %2, %cst {dimension_numbers = #tpu.dot_dimension_numbers<[1], [0], [0], [1], [0, 0, 1, 1], [], []>} : vector<8x8xf32>, vector<8x256xf32>, vector<8x256xf32> -> vector<8x256xf32>
    %c0_4 = arith.constant 0 : index
    %c0_5 = arith.constant 0 : index
    %4 = vector.load %arg6[%c0_4, %c0_5] : memref<8x1xf32, #tpu.memory_space<vmem>>, vector<8x1xf32>
    %5 = vector.broadcast %4 : vector<8x1xf32> to vector<8x256xf32>
    %6 = arith.addf %3, %5 : vector<8x256xf32>
    %7 = arith.truncf %6 : vector<8x256xf32> to vector<8x256xbf16>
    %c0_6 = arith.constant 0 : index
    %c0_7 = arith.constant 0 : index
    %c0_8 = arith.constant 0 : index
    %8 = vector.load %arg3[%c0_6, %c0_7, %c0_8] : memref<1x8x256xf32, #tpu.memory_space<vmem>>, vector<1x8x256xf32>
    %9 = vector.shape_cast %8 : vector<1x8x256xf32> to vector<8x256xf32>
    %10 = arith.truncf %9 : vector<8x256xf32> to vector<8x256xbf16>
    %cst_9 = arith.constant dense<0.000000e+00> : vector<256x256xf32>
    %11 = tpu.matmul %10, %7, %cst_9 {dimension_numbers = #tpu.dot_dimension_numbers<[0], [0], [1], [1], [0, 1, 1, 1], [], []>} : vector<8x256xbf16>, vector<8x256xbf16>, vector<256x256xf32> -> vector<256x256xf32>
    %cst_10 = arith.constant dense<0xFF800000> : vector<256xf32>
    %12 = vector.multi_reduction <maximumf>, %11, %cst_10 [0] : vector<256x256xf32> to vector<256xf32>
    %13 = vector.shape_cast %12 : vector<256xf32> to vector<1x256xf32>
    %14 = vector.broadcast %13 : vector<1x256xf32> to vector<256x256xf32>
    %15 = arith.subf %11, %14 : vector<256x256xf32>
    %16 = math.exp %15 : vector<256x256xf32>
    %cst_11 = arith.constant dense<0.000000e+00> : vector<256xf32>
    %17 = vector.multi_reduction <add>, %16, %cst_11 [0] : vector<256x256xf32> to vector<256xf32>
    %18 = vector.shape_cast %17 : vector<256xf32> to vector<1x256xf32>
    %c0_12 = arith.constant 0 : index
    %c0_13 = arith.constant 0 : index
    %19 = vector.load %arg7[%c0_12, %c0_13] : memref<8x8xf32, #tpu.memory_space<vmem>>, vector<8x8xf32>
    %20 = arith.truncf %19 : vector<8x8xf32> to vector<8x8xbf16>
    %cst_14 = arith.constant dense<0.000000e+00> : vector<8x256xf32>
    %21 = tpu.matmul %20, %10, %cst_14 {dimension_numbers = #tpu.dot_dimension_numbers<[1], [0], [0], [1], [0, 0, 1, 1], [], []>} : vector<8x8xbf16>, vector<8x256xbf16>, vector<8x256xf32> -> vector<8x256xf32>
    %22 = arith.truncf %21 : vector<8x256xf32> to vector<8x256xbf16>
    %23 = arith.truncf %16 : vector<256x256xf32> to vector<256x256xbf16>
    %cst_15 = arith.constant dense<0.000000e+00> : vector<8x256xf32>
    %24 = tpu.matmul %22, %23, %cst_15 {dimension_numbers = #tpu.dot_dimension_numbers<[1], [0], [0], [1], [0, 0, 1, 1], [], []>} : vector<8x256xbf16>, vector<256x256xbf16>, vector<8x256xf32> -> vector<8x256xf32>
    %c0_16 = arith.constant 0 : index
    %c0_17 = arith.constant 0 : index
    %25 = memref.load %arg9[%c0_16, %c0_17] : memref<1x1xf32, #tpu.memory_space<smem>>
    %26 = tpu.reciprocal %18 : vector<1x256xf32> -> vector<1x256xf32>
    %27 = vector.broadcast %25 : f32 to vector<1x256xf32>
    %28 = arith.mulf %27, %26 : vector<1x256xf32>
    %29 = vector.broadcast %28 : vector<1x256xf32> to vector<8x256xf32>
    %30 = arith.mulf %24, %29 : vector<8x256xf32>
    %c0_18 = arith.constant 0 : index
    %c0_19 = arith.constant 0 : index
    %31 = vector.load %arg8[%c0_18, %c0_19] : memref<8x1xf32, #tpu.memory_space<vmem>>, vector<8x1xf32>
    %32 = vector.broadcast %25 : f32 to vector<8x1xf32>
    %33 = arith.mulf %32, %31 : vector<8x1xf32>
    %34 = vector.broadcast %33 : vector<8x1xf32> to vector<8x256xf32>
    %35 = arith.addf %30, %34 : vector<8x256xf32>
    %c0_20 = arith.constant 0 : index
    %c0_21 = arith.constant 0 : index
    %c0_22 = arith.constant 0 : index
    %36 = vector.load %arg4[%c0_20, %c0_21, %c0_22] : memref<1x8x256xf32, #tpu.memory_space<vmem>>, vector<1x8x256xf32>
    %37 = vector.shape_cast %36 : vector<1x8x256xf32> to vector<8x256xf32>
    %38 = arith.addf %35, %37 : vector<8x256xf32>
    %c0_23 = arith.constant 0 : index
    %c0_24 = arith.constant 0 : index
    %c0_25 = arith.constant 0 : index
    %39 = vector.load %arg10[%c0_23, %c0_24, %c0_25] : memref<1x8x256xf32, #tpu.memory_space<vmem>>, vector<1x8x256xf32>
    %40 = vector.shape_cast %39 : vector<1x8x256xf32> to vector<8x256xf32>
    %41 = vector.shape_cast %38 : vector<8x256xf32> to vector<1x8x256xf32>
    tpu.vector_store %arg10[%c0_23, %c0_24, %c0_25], %41 {strides = array<i32>} : memref<1x8x256xf32, #tpu.memory_space<vmem>>, vector<1x8x256xf32>,
    return
  }
  func.func @transform_0(%arg0: i32, %arg1: i32) -> (i32, i32, i32) {
    %c0_i32 = arith.constant 0 : i32
    %c0_i32_0 = arith.constant 0 : i32
    return %arg0, %c0_i32, %arg1 : i32, i32, i32
  }
  func.func @transform_1(%arg0: i32, %arg1: i32) -> (i32, i32, i32) {
    %c0_i32 = arith.constant 0 : i32
    %c0_i32_0 = arith.constant 0 : i32
    %c0_i32_1 = arith.constant 0 : i32
    return %arg0, %c0_i32, %c0_i32_0 : i32, i32, i32
  }
  func.func @transform_2(%arg0: i32, %arg1: i32) -> (i32, i32, i32) {
    %c0_i32 = arith.constant 0 : i32
    %c0_i32_0 = arith.constant 0 : i32
    return %arg0, %c0_i32, %arg1 : i32, i32, i32
  }
  func.func @transform_3(%arg0: i32, %arg1: i32) -> (i32, i32) {
    %c0_i32 = arith.constant 0 : i32
    %c0_i32_0 = arith.constant 0 : i32
    %c0_i32_1 = arith.constant 0 : i32
    return %c0_i32, %c0_i32_0 : i32, i32
  }
  func.func @transform_4(%arg0: i32, %arg1: i32) -> (i32, i32) {
    %c0_i32 = arith.constant 0 : i32
    %c0_i32_0 = arith.constant 0 : i32
    %c0_i32_1 = arith.constant 0 : i32
    return %c0_i32, %c0_i32_0 : i32, i32
  }
  func.func @transform_5(%arg0: i32, %arg1: i32) -> (i32, i32) {
    %c0_i32 = arith.constant 0 : i32
    %c0_i32_0 = arith.constant 0 : i32
    %c0_i32_1 = arith.constant 0 : i32
    return %c0_i32, %c0_i32_0 : i32, i32
  }
  func.func @transform_6(%arg0: i32, %arg1: i32) -> (i32, i32) {
    %c0_i32 = arith.constant 0 : i32
    %c0_i32_0 = arith.constant 0 : i32
    %c0_i32_1 = arith.constant 0 : i32
    return %c0_i32, %c0_i32_0 : i32, i32
  }
  func.func @transform_7(%arg0: i32, %arg1: i32) -> (i32, i32) {
    %c0_i32 = arith.constant 0 : i32
    %c0_i32_0 = arith.constant 0 : i32
    %c0_i32_1 = arith.constant 0 : i32
    return %c0_i32, %c0_i32_0 : i32, i32
  }
  func.func @transform_8(%arg0: i32, %arg1: i32) -> (i32, i32, i32) {
    %c0_i32 = arith.constant 0 : i32
    %c0_i32_0 = arith.constant 0 : i32
    return %arg0, %c0_i32, %arg1 : i32, i32, i32
  }
}

</mosaic_0001>

<bundles_post_ra>
// kernel: tpu_custom_call.1
= control target key start
LH: loop header
LB: loop body
LE: loop exit
PB: predicated region body
PF: predicated region fallthrough
CT: control target
= control target key end

     0   :  { %s2678_s0 = inlined_call_operand.hbm [shape: f32[2,8,256], index: 0, kind: input, shape index: {}]   ;;  %s2679_s1 = inlined_call_operand.hbm [shape: f32[2,8,256], index: 1, kind: input, shape index: {}]   ;;  %s2680_s2 = inlined_call_operand.hbm [shape: f32[2,8,256], index: 2, kind: input, shape index: {}]   ;;  %s2681_s3 = inlined_call_operand.vmem [shape: f32[8,8], index: 3, kind: input, shape index: {}]   ;;  %s2682_s4 = inlined_call_operand.vmem [shape: f32[8,1], index: 4, kind: input, shape index: {}]   ;;  %s2683_s5 = inlined_call_operand.vmem [shape: f32[8,8], index: 5, kind: input, shape index: {}]   ;;  %s2684_s6 = inlined_call_operand.vmem [shape: f32[8,1], index: 6, kind: input, shape index: {}]   ;;  %s2685_s7 = inlined_call_operand.<no memory space> [shape: f32[1,1], index: 7, kind: input, shape index: {}]   ;;  %s2686_s8 = inlined_call_operand.hbm [shape: f32[2,8,256], index: 8, kind: output, shape index: {}]  }
   0x1   :  { %2713 = sst [smem:[#allocation36_spill]] %s2679_s1 }
   0x2   :  { %13 = sst [smem:[#allocation2]] %s2685_s7 }
   0x3   :  { %14 = vsyncpa [#allocation4], 0 }
   0x4   :  { %16 = vsyncpa [#allocation4 + $0x1], 0 }
   0x5   :  { %17 = vsyncpa [#allocation7], 0 }
   0x6   :  { %19 = vsyncpa [#allocation7 + $0x1], 0 }
   0x7   :  { %20 = vsyncpa [#allocation5], 0 }
   0x8   :  { %22 = vsyncpa [#allocation5 + $0x1], 0  ;;  %s1904_s29 = smov 0   ;;  %s1906_s30 = smov 0  }
   0x9   :  { %s1908_s9 = smov 0   ;;  %s1910_s10 = smov 0  }
   0xa   :  { %s1912_s11 = smov 0   ;;  %s1914_s12 = smov 0  }
   0xb LB: > { %2714 = sst [smem:[#allocation13_spill]] %s1833_s29  ;;  %s1935_s7 = sadd.s32 4294967295, %s1853_s12   ;;  %s1853_s12 = sphi %s1914_s12, %s28_s12   ;;  %s1849_s11 = sphi %s1912_s11, %s2775_s11   ;;  %s1845_s10 = sphi %s1910_s10, %s2774_s10   ;;  %s1841_s9 = sphi %s1908_s9, %s2773_s9   ;;  %s1837_s30 = sphi %s1906_s30, %s2777_s30   ;;  %s1833_s29 = sphi %s1904_s29, %s2776_s29  }
   0xc   : > { %2715 = sst [smem:[#allocation14_spill]] %s1841_s9  ;;  %s1406_s13 = sadd.s32 4294967294, %s1853_s12  }
   0xd   : > { %2716 = sst [smem:[#allocation15_spill]] %s1849_s11  ;;  %s40_s14 = sadd.s32 1, %s1849_s11 }
   0xe   : > { %2717 = sst [smem:[#allocation16_spill]] %s1853_s12  ;;  %s49_s15 = sadd.s32 1, %s1841_s9 }
   0xf   : > { %p42_p0 = scmp.ge.s32.totalorder %s40_s14, 2  ;;  %p56_p1 = scmp.ne.s32.totalorder %s1841_s9, %s1837_s30 }
  0x10   : > { %p57_p2 = scmp.eq.s32.totalorder %s1853_s12, 0  ;;  %p62_p3 = scmp.ne.s32.totalorder %s1837_s30, %s1833_s29 }
  0x11   : > { %s2779_s14 = smov (%p42_p0, %s40_s14), 0  ;;  %p63_p5 = scmp.eq.s32.totalorder %s1935_s7, 0 }
  0x12   : > { %2718 = sst [smem:[#allocation17_spill]] %s2779_s14  ;;  %p1947_p4 = por %p57_p2, %p56_p1 }
  0x13   : > { %s44_s17 = ssub.s32 %s1849_s11, %s2779_s14  ;;  %p247_p6 = scmp.eq.s32.totalorder %s1935_s7, 1 }
  0x14   : > { %p47_p7 = scmp.eq.s32.totalorder %s44_s17, 0  ;;  %p1955_p8 = por %p63_p5, %p62_p3 }
  0x15   : > { %p1959_p9 = por %p247_p6, %p56_p1  ;;  %p253_p10 = scmp.eq.s32.totalorder %s1406_s13, 1 }
  0x16   : > { %s1964_s20 = scalar_select %p47_p7, %s1841_s9, %s49_s15  }
  0x17   : > { %p1966_p11 = por %p253_p10, %p62_p3  ;;  %p1408_p12 = scmp.ge.s32.totalorder %s1853_s12, 2 }
  0x18   : > { %2722 = sst [smem:[#allocation18_spill]] %s1964_s20  ;;  %p1492_p13 = scmp.lt.s32.totalorder %s1853_s12, 2 }
  0x19   : > { %s2723_s21 = scalar_select %p1966_p11, 1, 0 }
  0x1a   : > { %s288_s22 = sand.u32 1, %s1841_s9   ;;  %s1464_s24 = sshll.u32 %s1849_s11, 4 }
  0x1b   : > { %2724 = sst [smem:[#allocation19_spill]] %s2723_s21  ;;  %s1409_s23 = sshll.u32 %s288_s22, 4 }
  0x1c   : > { %p1976_p0 = pnand %p1492_p13, %p1947_p4  ;;  %s310_s26 = sand.u32 1, %s1853_s12  }
  0x1d   : > { %s2726_s1 = sld [smem:[#allocation36_spill]]  ;;  %s314_s17 = scalar_lea.vmem [#allocation6], %s1409_s23 }
  0x1e   : > { %s323_s14 = sshll.u32 %s314_s17, 4  ;;  %s311_s20 = scalar_lea.sflag [#allocation7], %s310_s26  ;;  %s324_s14 = int_to_ptr.vmem [resolvable:$true] %s323_s14 }
  0x1f   : > { %p1418_p1 = scmp.ge.s32.totalorder %s1853_s12, 1  ;;  %p350_p2 = scmp.lt.s32.totalorder %s1853_s12, 3 }
  0x20   : > { %s299_s27 = scalar_lea.hbm %s2678_s0, %s1464_s24  ;;  %s289_s17 = scalar_lea.sflag [#allocation4], %s288_s22 }
  0x21   : > { %p1988_p3 = pnand %p1418_p1, %p350_p2  ;;  %s301_s28 = sshll.u32 %s299_s27, 4  ;;  %s302_s28 = int_to_ptr.hbm [resolvable:$true] %s301_s28 }
  0x22   : > { %s334_s21 = scalar_lea.vmem [#allocation8], %s1409_s23 }
  0x23   : > { %s319_s13 = scalar_lea.hbm %s2726_s1, %s1464_s24  ;;  %s345_s29 = sshll.u32 %s334_s21, 4  ;;  %s346_s29 = int_to_ptr.vmem [resolvable:$true] %s345_s29 }
  0x24   : > { %s321_s15 = sshll.u32 %s319_s13, 4  ;;  %s292_s13 = scalar_lea.vmem [#allocation3], %s1409_s23  ;;  %s322_s15 = int_to_ptr.hbm [resolvable:$true] %s321_s15 }
  0x25   : > { %1484 = dma.hbm_to_vmem [thread:$0]  (!%p1976_p0), %s322_s15, 256, %s324_s14, %s311_s20  }
  0x26   : > { %s303_s1 = sshll.u32 %s292_s13, 4  ;;  %s341_s15 = scalar_lea.hbm %s2680_s2, %s1464_s24  ;;  %s304_s1 = int_to_ptr.vmem [resolvable:$true] %s303_s1 }
  0x27   : > { %1481 = dma.hbm_to_vmem [thread:$0]  (!%p1976_p0), %s302_s28, 256, %s304_s1, %s289_s17  }
  0x28   : > { %s343_s12 = sshll.u32 %s341_s15, 4  ;;  %354 = sbr.rel (%p1988_p3) target bundleno = 959 (0x3bf), region = 52  ;;  %s344_s12 = int_to_ptr.hbm [resolvable:$true] %s343_s12 }
  0x29   : > { %1487 = dma.hbm_to_vmem [thread:$0]  (!%p1976_p0), %s344_s12, 256, %s346_s29, %s311_s20  }
  0x2d   : > { %s2005_s9 = sand.u32 1, %s1837_s30  }
  0x2e   : > { %s2008_s1 = sshll.u32 %s2005_s9, 4  ;;  %s357_s11 = scalar_lea.sflag [#allocation4], %s2005_s9 }
  0x2f   : > { %s360_s22 = scalar_lea.vmem [#allocation3], %s2008_s1 }
  0x30   : > { %1820 = dma.done.wait (%p1955_p8), %s357_s11, 256  }
  0x31   : > { %1822 = vsyncadd (%p1955_p8), %s357_s11, 4294967040  ;;  %s366_s29 = sand.u32 1, %s1935_s7   ;;  %s370_s20 = scalar_lea.vmem [#allocation6], %s2008_s1 }
  0x32   : > { %s367_s12 = scalar_lea.sflag [#allocation7], %s366_s29 }
  0x33   : > { %1824 = dma.done.wait (%p1955_p8), %s367_s12, 512  }
  0x34   : > { %1826 = vsyncadd (%p1955_p8), %s367_s12, 4294966784  ;;  %v483_v0 = vld [vmem:[%s370_s20] sm:$0xff]  ;;  %v484_v1 = vld [vmem:[%s370_s20 + $0x8] sm:$0xff]  ;;  %vm437_vm0 = vcmask 64512   ;;  %v1855_v7 = vmov 0   ;;  %vm559_vm1 = vcmask 1043456  }
  0x35   : > { %v2022_v2 = vpack.c.bf16 %v483_v0, %v483_v0  ;;  %v2024_v3 = vpack.c.bf16 %v484_v1, %v484_v1  ;;  %v429_v4 = vld [vmem:[%s360_s22] sm:$0xff]  ;;  %v430_v5 = vld [vmem:[%s360_s22 + $0x8] sm:$0xff]  ;;  %1544 = vset.pattern.permute.xlu1 %v1855_v7  ;;  %s1207_s16 = sld [smem:[#allocation2]]  ;;  %s380_s13 = scalar_lea.vmem [#allocation8], %s2008_s1 }
  0x36   : > { %v428_v6 = vld [vmem:[%s2681_s3] sm:$0xff]  ;;  %456 = vmatpush.msra.mxu0 %v429_v4  ;;  %476 = vmatpush.msra.mxu1 %v430_v5  ;;  %s423_s17 = scalar_lea.vmem [#allocation9], %s2008_s1  ;;  %s1467_s14 = sshll.u32 %s1845_s10, 4 }
  0x37   : > { %487 = vxpose.binary.xlu0.c.b16.start.end [1/2] (short) %v2024_v3, %v2022_v2, 128  ;;  %v431_v13 = vld [vmem:[%s2682_s4] sm:$0xff]  ;;  %v1090_v36 = vsel %vm559_vm1, %v2022_v2, 0  ;;  %v1093_v37 = vsel %vm559_vm1, %v2024_v3, 0  ;;  %s1270_s11 = scalar_lea.hbm %s2686_s8, %s1467_s14  ;;  %s1272_s22 = sshll.u32 %s423_s17, 4  ;;  %s1273_s22 = int_to_ptr.vmem [resolvable:$true] %s1272_s22 }
  0x38   : > { %1423 = vmatmul.msk.f32.vlgmr.msra.gmra.mxu0 %vm437_vm0, %v428_v6  ;;  %1424 = vmatmul.msk.f32.vlgmr.msra.gmra.mxu1 %vm437_vm0, %v428_v6  ;;  %v1084_v58 = vld [vmem:[%s2683_s5] sm:$0xff]  ;;  %s1274_s29 = sshll.u32 %s1270_s11, 4  ;;  %s1257_s1 = scalar_lea.sflag [#allocation5], %s2005_s9  ;;  %s1275_s29 = int_to_ptr.hbm [resolvable:$true] %s1274_s29 }
  0x39   : > { %v1085_v59 = vpack.c.bf16 %v1084_v58, %v1084_v58  ;;  %s1781_s10 = sshra.s32 %s1275_s29, 4  ;;  %s1787_s7 = scalar_lea.hbm %s2686_s8, 32  ;;  %s1782_s10 = int_to_ptr.hbm [resolvable:$true] %s1781_s10 }
  0x3a   : > { %s1783_s12 = scalar_lea.hbm %s1782_s10, 16  ;;  %p1788_p7 = scmp.lt.s32.totalorder %s1782_s10, %s2686_s8 }
  0x3b   : > { %p1784_p4 = scmp.ne.s32.totalorder %s1782_s10, %s1783_s12  ;;  %p1789_p8 = scmp.lt.s32.totalorder %s1787_s7, %s1783_s12 }
  0x3d   : > { %p1785_p5 = pnand %p1784_p4, %p1959_p9  ;;  %p1790_p10 = por %p1789_p8, %p1788_p7 }
  0x3f   : > { %p1786_p6 = pneg %p1785_p5 }
  0x41   : > { %p1791_p13 = pnand %p1790_p10, %p1786_p6 }
  0x9e   : > { %1543 = vset.pattern.permute.xlu0 %v1855_v7 }
  0xb5   : > { %v458_v25 = vpop.f32.mrf.mxu0  ;;  %v478_v26 = vpop.f32.mrf.mxu1 }
  0xe3   : > { %v495_v8 = vpop.trf.xlu0 }
  0xeb   : > { %v496_v9 = vpop.trf.xlu0 }
  0xf3   : > { %v497_v10 = vpop.trf.xlu0 }
  0xfb   : > { %v498_v11 = vpop.trf.xlu0 }
 0x103   : > { %v499_v12 = vpop.trf.xlu0 }
 0x10b   : > { %v500_v14 = vpop.trf.xlu0 }
 0x113   : > { %v501_v15 = vpop.trf.xlu0 }
 0x115   : > { %434 = vperm.xlu0 %1543, %v431_v13  }
 0x11b   : > { %v502_v16 = vpop.trf.xlu0 }
 0x123   : > { %v503_v17 = vpop.trf.xlu0 }
 0x12b   : > { %v504_v18 = vpop.trf.xlu0 }
 0x133   : > { %v505_v19 = vpop.trf.xlu0 }
 0x13b   : > { %v506_v20 = vpop.trf.xlu0 }
 0x143   : > { %v507_v21 = vpop.trf.xlu0 }
 0x14b   : > { %v508_v22 = vpop.trf.xlu0 }
 0x153   : > { %v509_v23 = vpop.trf.xlu0 }
 0x15b   : > { %v510_v24 = vpop.trf.xlu0 }
 0x187   : > { %v435_v27 = vpop.permute.xlu0 %434 }
 0x188   : > { %v459_v28 = vadd.f32 %v458_v25, %v435_v27  ;;  %v479_v29 = vadd.f32 %v478_v26, %v435_v27 }
 0x18a   : > { %v481_v30 = vpack.c.bf16 %v459_v28, %v459_v28  ;;  %v482_v31 = vpack.c.bf16 %v479_v29, %v479_v29 }
 0x18c   : > { %v561_v32 = vsel %vm559_vm1, %v481_v30, 0  ;;  %v564_v33 = vsel %vm559_vm1, %v482_v31, 0 }
 0x18d   : > { %573 = vmatpush.bf16.msrb.mxu0 %v561_v32  ;;  %1468 = vmatpush.bf16.msra.mxu2 %v561_v32 }
 0x18e   : > { %662 = vmatpush.bf16.msrb.mxu1 %v564_v33  ;;  %1469 = vmatpush.bf16.msra.mxu3 %v564_v33 }
 0x190   : > { %1425 = vmatmul.msk.bf16.vlgmr.msrb.gmra.mxu0 %vm437_vm0, %v495_v8  ;;  %1430 = vmatmul.msk.bf16.vlgmr.msra.gmra.mxu2 %vm437_vm0, %v505_v19 }
 0x191   : > { %1441 = vmatmul.msk.bf16.vlgmr.msrb.gmra.mxu1 %vm437_vm0, %v495_v8  ;;  %1446 = vmatmul.msk.bf16.vlgmr.msra.gmra.mxu3 %vm437_vm0, %v505_v19 }
 0x192   : > { %1102 = vmatpush.bf16.msra.mxu0 %v1090_v36  ;;  %1115 = vmatpush.bf16.msra.mxu1 %v1093_v37 }
 0x1a0   : > { %1426 = vmatmul.msk.bf16.gmra.mxu0 %vm437_vm0, %v497_v10  ;;  %1431 = vmatmul.msk.bf16.gmra.mxu2 %vm437_vm0, %v507_v21 }
 0x1a1   : > { %1442 = vmatmul.msk.bf16.gmra.mxu1 %vm437_vm0, %v497_v10  ;;  %1447 = vmatmul.msk.bf16.gmra.mxu3 %vm437_vm0, %v507_v21 }
 0x1b0   : > { %1427 = vmatmul.msk.bf16.gmra.mxu0 %vm437_vm0, %v499_v12  ;;  %1432 = vmatmul.msk.bf16.gmra.mxu2 %vm437_vm0, %v509_v23 }
 0x1b1   : > { %1443 = vmatmul.msk.bf16.gmra.mxu1 %vm437_vm0, %v499_v12  ;;  %1448 = vmatmul.msk.bf16.gmra.mxu3 %vm437_vm0, %v509_v23 }
 0x1c0   : > { %1428 = vmatmul.msk.bf16.gmra.mxu0 %vm437_vm0, %v501_v15  ;;  %1433 = vmatmul.msk.bf16.gmra.mxu2 %vm437_vm0, %v496_v9 }
 0x1c1   : > { %1444 = vmatmul.msk.bf16.gmra.mxu1 %vm437_vm0, %v501_v15  ;;  %1449 = vmatmul.msk.bf16.gmra.mxu3 %vm437_vm0, %v496_v9 }
 0x1d0   : > { %1429 = vmatmul.msk.bf16.gmra.mxu0 %vm437_vm0, %v503_v17  ;;  %1434 = vmatmul.msk.bf16.gmra.mxu2 %vm437_vm0, %v498_v11 }
 0x1d1   : > { %1445 = vmatmul.msk.bf16.gmra.mxu1 %vm437_vm0, %v503_v17  ;;  %1450 = vmatmul.msk.bf16.gmra.mxu3 %vm437_vm0, %v498_v11 }
 0x1e0   : > { %1435 = vmatmul.msk.bf16.gmra.mxu2 %vm437_vm0, %v500_v14  ;;  %1457 = vmatmul.msk.bf16.vlgmr.msra.gmra.mxu0 %vm437_vm0, %v1085_v59 }
 0x1e1   : > { %1451 = vmatmul.msk.bf16.gmra.mxu3 %vm437_vm0, %v500_v14  ;;  %1458 = vmatmul.msk.bf16.vlgmr.msra.gmra.mxu1 %vm437_vm0, %v1085_v59 }
 0x1f0   : > { %1436 = vmatmul.msk.bf16.gmra.mxu2 %vm437_vm0, %v502_v16 }
 0x1f1   : > { %1452 = vmatmul.msk.bf16.gmra.mxu3 %vm437_vm0, %v502_v16 }
 0x200   : > { %1437 = vmatmul.msk.bf16.gmra.mxu2 %vm437_vm0, %v504_v18 }
 0x201   : > { %1453 = vmatmul.msk.bf16.gmra.mxu3 %vm437_vm0, %v504_v18 }
 0x20d   : > { %v2098_v48 = vpop.f32.mrf.mxu0 }
 0x20e   : > { %v2110_v54 = vpop.f32.mrf.mxu1 }
 0x210   : > { %1438 = vmatmul.msk.bf16.gmra.mxu2 %vm437_vm0, %v506_v20 }
 0x211   : > { %1454 = vmatmul.msk.bf16.gmra.mxu3 %vm437_vm0, %v506_v20 }
 0x213   : > { %v2066_v34 = vpop.f32.mrf.mxu2 }
 0x214   : > { %2728 = vst [vmem:[#allocation20_spill] sm:$0xff] %v2066_v34  ;;  %v2068_v35 = vpop.f32.mrf.mxu3 }
 0x215   : > { %v2104_v51 = vpop.f32.mrf.mxu0 }
 0x216   : > { %v2123_v60 = vpop.f32.mrf.mxu1 }
 0x217   : > { %2736 = vst [vmem:[#allocation28_spill] sm:$0xff] %v2123_v60 }
 0x21b   : > { %v2074_v38 = vpop.f32.mrf.mxu2 }
 0x21c   : > { %2729 = vst [vmem:[#allocation21_spill] sm:$0xff] %v2074_v38  ;;  %v2076_v39 = vpop.f32.mrf.mxu3 }
 0x21d   : > { %2730 = vst [vmem:[#allocation22_spill] sm:$0xff] %v2076_v39  ;;  %v2112_v55 = vpop.f32.mrf.mxu0 }
 0x21e   : > { %v2135_v2 = vpop.f32.mrf.mxu1  ;;  %v744_v23 = vmax.f32 %v2098_v48, %v2112_v55 }
 0x21f   : > { %2737 = vst [vmem:[#allocation29_spill] sm:$0xff] %v2135_v2 }
 0x220   : > { %1439 = vmatmul.msk.bf16.gmra.mxu2 %vm437_vm0, %v508_v22 }
 0x221   : > { %1455 = vmatmul.msk.bf16.gmra.mxu3 %vm437_vm0, %v508_v22 }
 0x223   : > { %v2080_v40 = vpop.f32.mrf.mxu2 }
 0x224   : > { %v2082_v41 = vpop.f32.mrf.mxu3 }
 0x225   : > { %2731 = vst [vmem:[#allocation23_spill] sm:$0xff] %v2082_v41  ;;  %v2129_v63 = vpop.f32.mrf.mxu0 }
 0x226   : > { %v2143_v6 = vpop.f32.mrf.mxu1 }
 0x227   : > { %2738 = vst [vmem:[#allocation30_spill] sm:$0xff] %v2143_v6 }
 0x22b   : > { %v2084_v42 = vpop.f32.mrf.mxu2 }
 0x22c   : > { %2732 = vst [vmem:[#allocation24_spill] sm:$0xff] %v2084_v42  ;;  %v2086_v43 = vpop.f32.mrf.mxu3 }
 0x22d   : > { %2733 = vst [vmem:[#allocation25_spill] sm:$0xff] %v2086_v43  ;;  %v2137_v3 = vpop.f32.mrf.mxu0 }
 0x22e   : > { %v2151_v10 = vpop.f32.mrf.mxu1  ;;  %v746_v26 = vmax.f32 %v744_v23, %v2137_v3 }
 0x230   : > { %1440 = vmatmul.msk.bf16.gmra.mxu2 %vm437_vm0, %v510_v24 }
 0x231   : > { %1456 = vmatmul.msk.bf16.gmra.mxu3 %vm437_vm0, %v510_v24  ;;  %v745_v24 = vmax.f32 %v2104_v51, %v2129_v63 }
 0x233   : > { %v2090_v44 = vpop.f32.mrf.mxu2 }
 0x234   : > { %v2092_v45 = vpop.f32.mrf.mxu3 }
 0x235   : > { %2734 = vst [vmem:[#allocation26_spill] sm:$0xff] %v2092_v45  ;;  %v2145_v7 = vpop.f32.mrf.mxu0 }
 0x236   : > { %v2159_v14 = vpop.f32.mrf.mxu1  ;;  %v747_v27 = vmax.f32 %v745_v24, %v2145_v7 }
 0x237   : > { %2739 = vst [vmem:[#allocation31_spill] sm:$0xff] %v2159_v14 }
 0x23b   : > { %v2094_v46 = vpop.f32.mrf.mxu2 }
 0x23c   : > { %v2096_v47 = vpop.f32.mrf.mxu3 }
 0x23d   : > { %2735 = vst [vmem:[#allocation27_spill] sm:$0xff] %v2096_v47  ;;  %v2153_v11 = vpop.f32.mrf.mxu0 }
 0x23e   : > { %v2169_v19 = vpop.f32.mrf.mxu1  ;;  %v748_v30 = vmax.f32 %v746_v26, %v2153_v11 }
 0x243   : > { %v2100_v49 = vpop.f32.mrf.mxu2 }
 0x244   : > { %v2102_v50 = vpop.f32.mrf.mxu3 }
 0x245   : > { %v2163_v16 = vpop.f32.mrf.mxu0 }
 0x246   : > { %2740 = vst [vmem:[#allocation32_spill] sm:$0xff] %v2163_v16  ;;  %v2181_v25 = vpop.f32.mrf.mxu1  ;;  %v749_v31 = vmax.f32 %v747_v27, %v2163_v16  ;;  %v782_v16 = vmax.f32 %v2123_v60, %v2143_v6 }
 0x247   : > { %2741 = vst [vmem:[#allocation33_spill] sm:$0xff] %v2181_v25 }
 0x24b   : > { %v2106_v52 = vpop.f32.mrf.mxu2 }
 0x24c   : > { %v2108_v53 = vpop.f32.mrf.mxu3 }
 0x24d   : > { %v2171_v20 = vpop.f32.mrf.mxu0 }
 0x24e   : > { %v750_v33 = vmax.f32 %v748_v30, %v2171_v20  ;;  %v2197_v59 = vpop.f32.mrf.mxu1 }
 0x250   : > { %v752_v37 = vmax.f32 %v750_v33, %v2066_v34  ;;  %v781_v33 = vmax.f32 %v2110_v54, %v2135_v2 }
 0x252   : > { %v754_v26 = vmax.f32 %v752_v37, %v2080_v40  ;;  %v783_v37 = vmax.f32 %v781_v33, %v2151_v10 }
 0x253   : > { %v2114_v56 = vpop.f32.mrf.mxu2 }
 0x254   : > { %v2116_v57 = vpop.f32.mrf.mxu3  ;;  %v756_v30 = vmax.f32 %v754_v26, %v2090_v44 }
 0x255   : > { %v2185_v28 = vpop.f32.mrf.mxu0 }
 0x256   : > { %v751_v36 = vmax.f32 %v749_v31, %v2185_v28 }
 0x258   : > { %v753_v58 = vmax.f32 %v751_v36, %v2074_v38  ;;  %v784_v36 = vmax.f32 %v782_v16, %v2159_v14  ;;  %v2212_v38 = vpop.f32.mrf.mxu1 }
 0x259   : > { %2742 = vst [vmem:[#allocation34_spill] sm:$0xff] %v2212_v38 }
 0x25a   : > { %v755_v27 = vmax.f32 %v753_v58, %v2084_v42  ;;  %v786_v58 = vmax.f32 %v784_v36, %v2181_v25  ;;  %v758_v42 = vmax.f32 %v756_v30, %v2100_v49 }
 0x25b   : > { %v2125_v61 = vpop.f32.mrf.mxu2 }
 0x25c   : > { %v2127_v62 = vpop.f32.mrf.mxu3  ;;  %v757_v31 = vmax.f32 %v755_v27, %v2094_v46  ;;  %v785_v27 = vmax.f32 %v783_v37, %v2169_v19  ;;  %v788_v2 = vmax.f32 %v786_v58, %v2212_v38  ;;  %v760_v14 = vmax.f32 %v758_v42, %v2114_v56 }
 0x25e   : > { %v759_v6 = vmax.f32 %v757_v31, %v2106_v52  ;;  %v787_v16 = vmax.f32 %v785_v27, %v2197_v59  ;;  %v790_v33 = vmax.f32 %v788_v2, %v2076_v39 }
 0x260   : > { %v761_v60 = vmax.f32 %v759_v6, %v2125_v61  ;;  %v789_v31 = vmax.f32 %v787_v16, %v2068_v35  ;;  %v792_v27 = vmax.f32 %v790_v33, %v2086_v43 }
 0x262   : > { %v791_v2 = vmax.f32 %v789_v31, %v2082_v41  ;;  %v794_v16 = vmax.f32 %v792_v27, %v2096_v47 }
 0x263   : > { %v2131_v0 = vpop.f32.mrf.mxu2 }
 0x264   : > { %v2133_v1 = vpop.f32.mrf.mxu3  ;;  %v762_v36 = vmax.f32 %v760_v14, %v2131_v0  ;;  %v793_v33 = vmax.f32 %v791_v2, %v2092_v45  ;;  %v796_v31 = vmax.f32 %v794_v16, %v2108_v53 }
 0x266   : > { %v798_v27 = vmax.f32 %v796_v31, %v2127_v62 }
 0x26b   : > { %v2139_v4 = vpop.f32.mrf.mxu2 }
 0x26c   : > { %v2141_v5 = vpop.f32.mrf.mxu3  ;;  %v763_v30 = vmax.f32 %v761_v60, %v2139_v4 }
 0x26d   : > { %v800_v47 = vmax.f32 %v798_v27, %v2141_v5 }
 0x273   : > { %v2147_v8 = vpop.f32.mrf.mxu2 }
 0x274   : > { %v2149_v9 = vpop.f32.mrf.mxu3  ;;  %v764_v37 = vmax.f32 %v762_v36, %v2147_v8 }
 0x27b   : > { %v2155_v12 = vpop.f32.mrf.mxu2 }
 0x27c   : > { %v2157_v13 = vpop.f32.mrf.mxu3  ;;  %v765_v58 = vmax.f32 %v763_v30, %v2155_v12 }
 0x283   : > { %v2161_v15 = vpop.f32.mrf.mxu2 }
 0x284   : > { %v2165_v17 = vpop.f32.mrf.mxu3  ;;  %v766_v42 = vmax.f32 %v764_v37, %v2161_v15 }
 0x28b   : > { %v2167_v18 = vpop.f32.mrf.mxu2 }
 0x28c   : > { %v2173_v21 = vpop.f32.mrf.mxu3  ;;  %v767_v6 = vmax.f32 %v765_v58, %v2167_v18 }
 0x293   : > { %v2175_v22 = vpop.f32.mrf.mxu2 }
 0x294   : > { %v2187_v29 = vpop.f32.mrf.mxu3  ;;  %v768_v60 = vmax.f32 %v766_v42, %v2175_v22  ;;  %v795_v42 = vmax.f32 %v793_v33, %v2102_v50 }
 0x29b   : > { %v2191_v32 = vpop.f32.mrf.mxu2 }
 0x29c   : > { %v2199_v23 = vpop.f32.mrf.mxu3  ;;  %v769_v14 = vmax.f32 %v767_v6, %v2191_v32 }
 0x2a3   : > { %v2201_v24 = vpop.f32.mrf.mxu2 }
 0x2a4   : > { %v2220_v26 = vpop.f32.mrf.mxu3  ;;  %v770_v36 = vmax.f32 %v768_v60, %v2201_v24 }
 0x2ab   : > { %v2214_v34 = vpop.f32.mrf.mxu2 }
 0x2ac   : > { %v2238_v38 = vpop.f32.mrf.mxu3  ;;  %v771_v30 = vmax.f32 %v769_v14, %v2214_v34  ;;  %v797_v14 = vmax.f32 %v795_v42, %v2116_v57 }
 0x2b3   : > { %v2230_v25 = vpop.f32.mrf.mxu2 }
 0x2b4   : > { %v772_v37 = vmax.f32 %v770_v36, %v2230_v25  ;;  %v2253_v41 = vpop.f32.mrf.mxu3  ;;  %v799_v36 = vmax.f32 %v797_v14, %v2133_v1 }
 0x2b6   : > { %v801_v16 = vmax.f32 %v799_v36, %v2149_v9 }
 0x2bb   : > { %v2246_v39 = vpop.f32.mrf.mxu2 }
 0x2bc   : > { %v773_v58 = vmax.f32 %v771_v30, %v2246_v39  ;;  %v802_v30 = vmax.f32 %v800_v47, %v2157_v13 }
 0x2be   : > { %v774_v43 = vmax.f32 %v772_v37, %v773_v58  ;;  %v804_v33 = vmax.f32 %v802_v30, %v2173_v21  ;;  %v803_v58 = vmax.f32 %v801_v16, %v2165_v17 }
 0x2c0   : > { %v775_v6 = vrot.slane %v774_v43, 4  ;;  %v806_v31 = vmax.f32 %v804_v33, %v2199_v23  ;;  %v805_v42 = vmax.f32 %v803_v58, %v2187_v29 }
 0x2c2   : > { %v776_v60 = vmax.f32 %v774_v43, %v775_v6  ;;  %v2264_v43 = vpop.f32.mrf.mxu3  ;;  %v808_v6 = vmax.f32 %v806_v31, %v2238_v38  ;;  %v807_v47 = vmax.f32 %v805_v42, %v2220_v26 }
 0x2c4   : > { %v777_v2 = vrot.slane %v776_v60, 2  ;;  %v809_v14 = vmax.f32 %v807_v47, %v2253_v41 }
 0x2c6   : > { %v778_v45 = vmax.f32 %v776_v60, %v777_v2  ;;  %v810_v60 = vmax.f32 %v808_v6, %v2264_v43 }
 0x2c8   : > { %v779_v37 = vrot.slane %v778_v45, 1  ;;  %v811_v16 = vmax.f32 %v809_v14, %v810_v60 }
 0x2ca   : > { %v2268_v27 = vmax.f32 %v778_v45, %v779_v37  ;;  %v812_v42 = vrot.slane %v811_v16, 4 }
 0x2cc   : > { %v818_v2 = vsub.f32 %v2098_v48, %v2268_v27  ;;  %v820_v36 = vsub.f32 %v2104_v51, %v2268_v27  ;;  %v822_v30 = vsub.f32 %v2112_v55, %v2268_v27  ;;  %v824_v45 = vsub.f32 %v2129_v63, %v2268_v27  ;;  %v2743_v63 = vld [vmem:[#allocation32_spill] sm:$0xff] }
 0x2cd   : > { %v826_v58 = vsub.f32 %v2137_v3, %v2268_v27  ;;  %v828_v48 = vsub.f32 %v2145_v7, %v2268_v27  ;;  %v830_v55 = vsub.f32 %v2153_v11, %v2268_v27  ;;  %v813_v47 = vmax.f32 %v811_v16, %v812_v42 }
 0x2ce   : > { %v882_v33 = vmul.f32 1.442695, %v818_v2  ;;  %v886_v37 = vmul.f32 1.442695, %v820_v36  ;;  %v890_v31 = vmul.f32 1.442695, %v822_v30  ;;  %v832_v60 = vsub.f32 %v2743_v63, %v2268_v27 }
 0x2cf   : > { %v894_v51 = vmul.f32 1.442695, %v824_v45  ;;  %v898_v6 = vmul.f32 1.442695, %v826_v58  ;;  %v902_v14 = vmul.f32 1.442695, %v828_v48  ;;  %v834_v2 = vsub.f32 %v2171_v20, %v2268_v27 }
 0x2d0   : > { %1545 = vpow2.f32 %v882_v33  ;;  %v836_v7 = vsub.f32 %v2185_v28, %v2268_v27  ;;  %v906_v11 = vmul.f32 1.442695, %v830_v55  ;;  %v2746_v30 = vld [vmem:[#allocation20_spill] sm:$0xff]  ;;  %v814_v33 = vrot.slane %v813_v47, 2  ;;  %v2747_v58 = vld [vmem:[#allocation21_spill] sm:$0xff] }
 0x2d1   : > { %1547 = vpow2.f32 %v886_v37  ;;  %v838_v16 = vsub.f32 %v2746_v30, %v2268_v27  ;;  %v910_v20 = vmul.f32 1.442695, %v832_v60  ;;  %v842_v42 = vsub.f32 %v2080_v40, %v2268_v27  ;;  %v2748_v55 = vld [vmem:[#allocation24_spill] sm:$0xff] }
 0x2d2   : > { %1549 = vpow2.f32 %v890_v31  ;;  %v840_v31 = vsub.f32 %v2747_v58, %v2268_v27  ;;  %v914_v28 = vmul.f32 1.442695, %v834_v2  ;;  %v918_v63 = vmul.f32 1.442695, %v836_v7 }
 0x2d3   : > { %1551 = vpow2.f32 %v894_v51  ;;  %v846_v30 = vsub.f32 %v2090_v44, %v2268_v27  ;;  %v815_v60 = vmax.f32 %v813_v47, %v814_v33  ;;  %v848_v40 = vsub.f32 %v2094_v46, %v2268_v27 }
 0x2d4   : > { %1553 = vpow2.f32 %v898_v6  ;;  %v844_v6 = vsub.f32 %v2748_v55, %v2268_v27  ;;  %v926_v2 = vmul.f32 1.442695, %v840_v31  ;;  %v852_v44 = vsub.f32 %v2106_v52, %v2268_v27 }
 0x2d5   : > { %1555 = vpow2.f32 %v902_v14  ;;  %v854_v47 = vsub.f32 %v2114_v56, %v2268_v27  ;;  %v938_v46 = vmul.f32 1.442695, %v846_v30  ;;  %v816_v31 = vrot.slane %v815_v60, 1 }
 0x2d6   : > { %v2289_v3 = vpop.eup %1545  ;;  %1557 = vpow2.f32 %v906_v11  ;;  %v930_v11 = vmul.f32 1.442695, %v842_v42  ;;  %v942_v42 = vmul.f32 1.442695, %v848_v40  ;;  %v858_v52 = vsub.f32 %v2131_v0, %v2268_v27 }
 0x2d7   : > { %2744 = vst [vmem:[#allocation32_spill] sm:$0xff] %v2289_v3  ;;  %v2293_v36 = vpop.eup %1547  ;;  %1559 = vpow2.f32 %v910_v20  ;;  %v856_v20 = vsub.f32 %v2125_v61, %v2268_v27  ;;  %v954_v30 = vmul.f32 1.442695, %v854_v47 }
 0x2d8   : > { %2745 = vst [vmem:[#allocation35_spill] sm:$0xff] %v2293_v36  ;;  %v1010_v45 = vadd.f32 %v2293_v36, %v2289_v3  ;;  %v2301_v37 = vpop.eup %1549  ;;  %v922_v36 = vmul.f32 1.442695, %v838_v16  ;;  %1561 = vpow2.f32 %v914_v28  ;;  %v934_v16 = vmul.f32 1.442695, %v844_v6 }
 0x2d9   : > { %v2308_v51 = vpop.eup %1551  ;;  %1563 = vpow2.f32 %v918_v63  ;;  %v862_v6 = vsub.f32 %v2147_v8, %v2268_v27  ;;  %v950_v63 = vmul.f32 1.442695, %v852_v44  ;;  %v878_v8 = vsub.f32 %v2230_v25, %v2268_v27 }
 0x2da   : > { %v1011_v48 = vadd.f32 %v2301_v37, %v1010_v45  ;;  %v2315_v58 = vpop.eup %1553  ;;  %v850_v45 = vsub.f32 %v2100_v49, %v2268_v27  ;;  %1565 = vpow2.f32 %v922_v36  ;;  %v860_v36 = vsub.f32 %v2139_v4, %v2268_v27 }
 0x2db   : > { %v2322_v55 = vpop.eup %1555  ;;  %1567 = vpow2.f32 %v926_v2  ;;  %v874_v2 = vsub.f32 %v2201_v24, %v2268_v27  ;;  %v958_v4 = vmul.f32 1.442695, %v856_v20  ;;  %v970_v24 = vmul.f32 1.442695, %v862_v6  ;;  %v2749_v20 = vld [vmem:[#allocation28_spill] sm:$0xff]  ;;  %v2750_v6 = vld [vmem:[#allocation29_spill] sm:$0xff] }
 0x2dc   : > { %v1012_v14 = vadd.f32 %v2308_v51, %v1011_v48  ;;  %v2329_v49 = vpop.eup %1557  ;;  %1569 = vpow2.f32 %v930_v11  ;;  %v946_v28 = vmul.f32 1.442695, %v850_v45  ;;  %v962_v11 = vmul.f32 1.442695, %v858_v52 }
 0x2dd   : > { %v2336_v48 = vpop.eup %1559  ;;  %1571 = vpow2.f32 %v934_v16  ;;  %v966_v47 = vmul.f32 1.442695, %v860_v36 }
 0x2de   : > { %v1013_v7 = vadd.f32 %v2315_v58, %v1012_v14  ;;  %v2342_v61 = vpop.eup %1561  ;;  %1573 = vpow2.f32 %v938_v46  ;;  %v2345_v14 = vmax.f32 %v815_v60, %v816_v31  ;;  %v880_v60 = vsub.f32 %v2246_v39, %v2268_v27 }
 0x2df   : > { %v2347_v40 = vpop.eup %1563  ;;  %1575 = vpow2.f32 %v942_v42  ;;  %v994_v31 = vmul.f32 1.442695, %v874_v2  ;;  %v876_v39 = vsub.f32 %v2214_v34, %v2268_v27 }
 0x2e0   : > { %v1014_v33 = vadd.f32 %v2322_v55, %v1013_v7  ;;  %v2351_v45 = vpop.eup %1565  ;;  %1577 = vpow2.f32 %v946_v28  ;;  %v819_v25 = vsub.f32 %v2110_v54, %v2345_v14  ;;  %v821_v42 = vsub.f32 %v2749_v20, %v2345_v14 }
 0x2e1   : > { %v2356_v44 = vpop.eup %1567  ;;  %1579 = vpow2.f32 %v950_v63  ;;  %v1002_v28 = vmul.f32 1.442695, %v878_v8  ;;  %v1006_v54 = vmul.f32 1.442695, %v880_v60  ;;  %v823_v63 = vsub.f32 %v2750_v6, %v2345_v14  ;;  %v2751_v8 = vld [vmem:[#allocation30_spill] sm:$0xff] }
 0x2e2   : > { %v1015_v56 = vadd.f32 %v2329_v49, %v1014_v33  ;;  %v2360_v16 = vpop.eup %1569  ;;  %1581 = vpow2.f32 %v954_v30  ;;  %v884_v34 = vmul.f32 1.442695, %v819_v25  ;;  %v827_v25 = vsub.f32 %v2151_v10, %v2345_v14 }
 0x2e3   : > { %v2365_v33 = vpop.eup %1571  ;;  %1583 = vpow2.f32 %v958_v4  ;;  %v868_v10 = vsub.f32 %v2167_v18, %v2268_v27 }
 0x2e4   : > { %v1016_v0 = vadd.f32 %v2336_v48, %v1015_v56  ;;  %v2369_v52 = vpop.eup %1573  ;;  %1585 = vpow2.f32 %v962_v11  ;;  %v825_v11 = vsub.f32 %v2751_v8, %v2345_v14  ;;  %v900_v8 = vmul.f32 1.442695, %v827_v25 }
 0x2e5   : > { %v2374_v36 = vpop.eup %1575  ;;  %1587 = vpow2.f32 %v966_v47  ;;  %v872_v47 = vsub.f32 %v2191_v32, %v2268_v27 }
 0x2e6   : > { %v1017_v7 = vadd.f32 %v2342_v61, %v1016_v0  ;;  %v2378_v30 = vpop.eup %1577  ;;  %v870_v0 = vsub.f32 %v2175_v22, %v2268_v27  ;;  %1589 = vpow2.f32 %v970_v24 }
 0x2e7   : > { %v2383_v4 = vpop.eup %1579  ;;  %1591 = vpow2.f32 %v994_v31  ;;  %v892_v31 = vmul.f32 1.442695, %v823_v63  ;;  %v990_v63 = vmul.f32 1.442695, %v872_v47 }
 0x2e8   : > { %v1018_v46 = vadd.f32 %v2347_v40, %v1017_v7  ;;  %v888_v7 = vmul.f32 1.442695, %v821_v42  ;;  %v2387_v60 = vpop.eup %1581  ;;  %1593 = vpow2.f32 %v1002_v28  ;;  %v866_v42 = vsub.f32 %v2161_v15, %v2268_v27 }
 0x2e9   : > { %v2392_v24 = vpop.eup %1583  ;;  %1595 = vpow2.f32 %v1006_v54  ;;  %v896_v54 = vmul.f32 1.442695, %v825_v11  ;;  %v864_v11 = vsub.f32 %v2155_v12, %v2268_v27  ;;  %v1137_v12 = vpack.c.bf16 %v2374_v36, %v2369_v52 }
 0x2ea   : > { %v1019_v56 = vadd.f32 %v2351_v45, %v1018_v46  ;;  %v998_v46 = vmul.f32 1.442695, %v876_v39  ;;  %v2396_v20 = vpop.eup %1585  ;;  %1597 = vpow2.f32 %v884_v34  ;;  %v2752_v39 = vld [vmem:[#allocation31_spill] sm:$0xff]  ;;  %v831_v34 = vsub.f32 %v2169_v19, %v2345_v14 }
 0x2eb   : > { %v2401_v32 = vpop.eup %1587  ;;  %v829_v28 = vsub.f32 %v2752_v39, %v2345_v14  ;;  %1599 = vpow2.f32 %v888_v7  ;;  %v978_v7 = vmul.f32 1.442695, %v866_v42  ;;  %v982_v19 = vmul.f32 1.442695, %v868_v10  ;;  %1155 = vmatpush.bf16.msrb.mxu0 %v1137_v12 }
 0x2ec   : > { %v1020_v2 = vadd.f32 %v2356_v44, %v1019_v56  ;;  %v986_v56 = vmul.f32 1.442695, %v870_v0  ;;  %1601 = vpow2.f32 %v998_v46  ;;  %v2753_v46 = vld [vmem:[#allocation33_spill] sm:$0xff]  ;;  %v908_v42 = vmul.f32 1.442695, %v831_v34 }
 0x2ed   : > { %1603 = vpow2.f32 %v892_v31  ;;  %v904_v39 = vmul.f32 1.442695, %v829_v28  ;;  %v835_v31 = vsub.f32 %v2197_v59, %v2345_v14 }
 0x2ee   : > { %v1021_v22 = vadd.f32 %v2360_v16, %v1020_v2  ;;  %v2405_v2 = vpop.eup %1589  ;;  %1605 = vpow2.f32 %v986_v56 }
 0x2ef   : > { %v2410_v0 = vpop.eup %1591  ;;  %1607 = vpow2.f32 %v896_v54  ;;  %v974_v54 = vmul.f32 1.442695, %v864_v11 }
 0x2f0   : > { %v1022_v6 = vadd.f32 %v2365_v33, %v1021_v22  ;;  %v2414_v22 = vpop.eup %1593  ;;  %1609 = vpow2.f32 %v990_v63 }
 0x2f1   : > { %v2419_v47 = vpop.eup %1595  ;;  %1611 = vpow2.f32 %v900_v8 }
 0x2f2   : > { %v1023_v15 = vadd.f32 %v2369_v52, %v1022_v6  ;;  %v833_v6 = vsub.f32 %v2753_v46, %v2345_v14  ;;  %v2423_v3 = vpop.eup %1597  ;;  %v1153_v56 = vpack.c.bf16 %v2419_v47, %v2414_v22  ;;  %1613 = vpow2.f32 %v978_v7 }
 0x2f3   : > { %2754 = vst [vmem:[#allocation20_spill] sm:$0xff] %v2423_v3  ;;  %v2428_v27 = vpop.eup %1599  ;;  %1615 = vpow2.f32 %v904_v39  ;;  %v1135_v7 = vpack.c.bf16 %v2365_v33, %v2360_v16  ;;  %v839_v46 = vsub.f32 %v2068_v35, %v2345_v14  ;;  %v2757_v16 = vld [vmem:[#allocation22_spill] sm:$0xff]  ;;  %v2758_v35 = vld [vmem:[#allocation23_spill] sm:$0xff] }
 0x2f4   : > { %v1024_v18 = vadd.f32 %v2374_v36, %v1023_v15  ;;  %2755 = vst [vmem:[#allocation21_spill] sm:$0xff] %v2428_v27  ;;  %v2434_v28 = vpop.eup %1601  ;;  %v1047_v63 = vadd.f32 %v2428_v27, %v2423_v3  ;;  %v2756_v36 = vld [vmem:[#allocation34_spill] sm:$0xff]  ;;  %v912_v15 = vmul.f32 1.442695, %v833_v6  ;;  %1168 = vmatpush.bf16.msrb.mxu1 %v1153_v56  ;;  %1617 = vpow2.f32 %v982_v19 }
 0x2f5   : > { %v2439_v52 = vpop.eup %1603  ;;  %v837_v59 = vsub.f32 %v2756_v36, %v2345_v14  ;;  %1619 = vpow2.f32 %v908_v42  ;;  %v1151_v6 = vpack.c.bf16 %v2434_v28, %v2410_v0  ;;  %1156 = vmatpush.bf16.msrb.mxu0 %v1135_v7  ;;  %v841_v33 = vsub.f32 %v2757_v16, %v2345_v14  ;;  %v2760_v16 = vld [vmem:[#allocation26_spill] sm:$0xff] }
 0x2f6   : > { %v1025_v25 = vadd.f32 %v2378_v30, %v1024_v18  ;;  %v2443_v34 = vpop.eup %1605  ;;  %v1048_v11 = vadd.f32 %v2439_v52, %v1047_v63  ;;  %1621 = vpow2.f32 %v974_v54  ;;  %v843_v42 = vsub.f32 %v2758_v35, %v2345_v14  ;;  %v2759_v54 = vld [vmem:[#allocation25_spill] sm:$0xff]  ;;  %v2761_v35 = vld [vmem:[#allocation27_spill] sm:$0xff] }
 0x2f7   : > { %v2449_v18 = vpop.eup %1607  ;;  %1623 = vpow2.f32 %v912_v15  ;;  %v845_v36 = vsub.f32 %v2759_v54, %v2345_v14  ;;  %v847_v27 = vsub.f32 %v2760_v16, %v2345_v14  ;;  %v924_v15 = vmul.f32 1.442695, %v839_v46 }
 0x2f8   : > { %v1026_v10 = vadd.f32 %v2383_v4, %v1025_v25  ;;  %v916_v25 = vmul.f32 1.442695, %v835_v31  ;;  %v2455_v39 = vpop.eup %1609  ;;  %v1049_v12 = vadd.f32 %v2449_v18, %v1048_v11  ;;  %v920_v31 = vmul.f32 1.442695, %v837_v59  ;;  %1169 = vmatpush.bf16.msrb.mxu1 %v1151_v6 }
 0x2f9   : > { %v2459_v56 = vpop.eup %1611  ;;  %v1133_v11 = vpack.c.bf16 %v2356_v44, %v2351_v45  ;;  %v1149_v59 = vpack.c.bf16 %v2455_v39, %v2443_v34  ;;  %v849_v54 = vsub.f32 %v2761_v35, %v2345_v14  ;;  %v853_v46 = vsub.f32 %v2108_v53, %v2345_v14 }
 0x2fa   : > { %v1027_v8 = vadd.f32 %v2387_v60, %v1026_v10  ;;  %v1614_v10 = vpop.eup %1613  ;;  %1625 = vpow2.f32 %v916_v25  ;;  %v855_v25 = vsub.f32 %v2116_v57, %v2345_v14  ;;  %v928_v16 = vmul.f32 1.442695, %v841_v33 }
 0x2fb   : > { %v2471_v7 = vpop.eup %1615  ;;  %1157 = vmatpush.bf16.msrb.mxu0 %v1133_v11  ;;  %1627 = vpow2.f32 %v920_v31  ;;  %v1131_v11 = vpack.c.bf16 %v2347_v40, %v2342_v61  ;;  %v932_v57 = vmul.f32 1.442695, %v843_v42  ;;  %v879_v40 = vsub.f32 %v2253_v41, %v2345_v14 }
 0x2fc   : > { %v1028_v19 = vadd.f32 %v2392_v24, %v1027_v8  ;;  %v1050_v8 = vadd.f32 %v2459_v56, %v1049_v12  ;;  %v1618_v6 = vpop.eup %1617  ;;  %v851_v12 = vsub.f32 %v2102_v50, %v2345_v14  ;;  %1170 = vmatpush.bf16.msrb.mxu1 %v1149_v59  ;;  %1629 = vpow2.f32 %v924_v15 }
 0x2fd   : > { %v2483_v44 = vpop.eup %1619  ;;  %v1147_v33 = vpack.c.bf16 %v1618_v6, %v1614_v10  ;;  %v861_v59 = vsub.f32 %v2141_v5, %v2345_v14  ;;  %1631 = vpow2.f32 %v928_v16  ;;  %v940_v15 = vmul.f32 1.442695, %v847_v27 }
 0x2fe   : > { %v1029_v63 = vadd.f32 %v2396_v20, %v1028_v19  ;;  %v1051_v45 = vadd.f32 %v2471_v7, %v1050_v8  ;;  %v881_v61 = vsub.f32 %v2264_v43, %v2345_v14  ;;  %1633 = vpow2.f32 %v932_v57 }
 0x2ff   : > { %1158 = vmatpush.bf16.msrb.mxu0 %v1131_v11  ;;  %v875_v11 = vsub.f32 %v2220_v26, %v2345_v14  ;;  %v1004_v26 = vmul.f32 1.442695, %v879_v40  ;;  %v1141_v40 = vpack.c.bf16 %v2392_v24, %v2387_v60 }
 0x300   : > { %v1030_v19 = vadd.f32 %v2401_v32, %v1029_v63  ;;  %v1622_v63 = vpop.eup %1621  ;;  %v1052_v8 = vadd.f32 %v2483_v44, %v1051_v45  ;;  %1171 = vmatpush.bf16.msrb.mxu1 %v1147_v33  ;;  %v956_v33 = vmul.f32 1.442695, %v855_v25 }
 0x301   : > { %v2495_v3 = vpop.eup %1623  ;;  %v1145_v41 = vpack.c.bf16 %v1622_v63, %v2405_v2 }
 0x302   : > { %v1031_v35 = vadd.f32 %v2405_v2, %v1030_v19  ;;  %v936_v19 = vmul.f32 1.442695, %v845_v36  ;;  %v1053_v50 = vadd.f32 %v2495_v3, %v1052_v8  ;;  %v2502_v45 = vpop.eup %1625  ;;  %v1129_v36 = vpack.c.bf16 %v2336_v48, %v2329_v49 }
 0x303   : > { %v2511_v8 = vpop.eup %1627  ;;  %v877_v49 = vsub.f32 %v2238_v38, %v2345_v14  ;;  %v952_v48 = vmul.f32 1.442695, %v853_v46  ;;  %v871_v38 = vsub.f32 %v2187_v29, %v2345_v14  ;;  %v1143_v46 = vpack.c.bf16 %v2401_v32, %v2396_v20 }
 0x304   : > { %v1032_v31 = vadd.f32 %v1622_v63, %v1031_v35  ;;  %v944_v35 = vmul.f32 1.442695, %v849_v54  ;;  %v1054_v53 = vadd.f32 %v2502_v45, %v1053_v50  ;;  %1635 = vpow2.f32 %v936_v19  ;;  %1159 = vmatpush.bf16.msrb.mxu0 %v1129_v36  ;;  %v2519_v16 = vpop.eup %1629  ;;  %1172 = vmatpush.bf16.msrb.mxu1 %v1145_v41 }
 0x305   : > { %1637 = vpow2.f32 %v940_v15  ;;  %v865_v63 = vsub.f32 %v2157_v13, %v2345_v14  ;;  %v1008_v50 = vmul.f32 1.442695, %v881_v61  ;;  %v867_v61 = vsub.f32 %v2165_v17, %v2345_v14 }
 0x306   : > { %v1033_v42 = vadd.f32 %v1614_v10, %v1032_v31  ;;  %v948_v10 = vmul.f32 1.442695, %v851_v12  ;;  %v1055_v54 = vadd.f32 %v2511_v8, %v1054_v53  ;;  %1639 = vpow2.f32 %v944_v35  ;;  %v2527_v12 = vpop.eup %1631 }
 0x307   : > { %v996_v53 = vmul.f32 1.442695, %v875_v11  ;;  %v1000_v31 = vmul.f32 1.442695, %v877_v49  ;;  %v2763_v17 = vsub.f32 %v2133_v1, %v2345_v14  ;;  %v2765_v11 = vld [vmem:[#allocation35_spill] sm:$0xff] }
 0x308   : > { %v1034_v27 = vadd.f32 %v1618_v6, %v1033_v42  ;;  %v1056_v2 = vadd.f32 %v2519_v16, %v1055_v54  ;;  %v1127_v6 = vpack.c.bf16 %v2322_v55, %v2315_v58  ;;  %1641 = vpow2.f32 %v948_v10  ;;  %v2537_v58 = vpop.eup %1633  ;;  %1173 = vmatpush.bf16.msrb.mxu1 %v1143_v46 }
 0x309   : > { %v873_v55 = vsub.f32 %v2199_v23, %v2345_v14  ;;  %1643 = vpow2.f32 %v952_v48  ;;  %v2762_v23 = vsub.f32 %v2127_v62, %v2345_v14  ;;  %v988_v42 = vmul.f32 1.442695, %v871_v38 }
 0x30a   : > { %v1035_v43 = vadd.f32 %v2443_v34, %v1034_v27  ;;  %v1057_v57 = vadd.f32 %v2527_v12, %v1056_v2  ;;  %1160 = vmatpush.bf16.msrb.mxu0 %v1127_v6  ;;  %v2541_v29 = vpop.eup %1635  ;;  %1645 = vpow2.f32 %v1004_v26  ;;  %v964_v62 = vmul.f32 1.442695, %v2763_v17  ;;  %v1104_v26 = vpop.f32.mrf.mxu0 }
 0x30b   : > { %v1638_v19 = vpop.eup %1637  ;;  %v960_v25 = vmul.f32 1.442695, %v2762_v23  ;;  %1647 = vpow2.f32 %v1008_v50  ;;  %v968_v1 = vmul.f32 1.442695, %v861_v59  ;;  %v980_v49 = vmul.f32 1.442695, %v867_v61 }
 0x30c   : > { %v1036_v34 = vadd.f32 %v2455_v39, %v1035_v43  ;;  %v1058_v32 = vadd.f32 %v2537_v58, %v1057_v57  ;;  %v1125_v39 = vpack.c.bf16 %v2308_v51, %v2301_v37  ;;  %v1640_v15 = vpop.eup %1639  ;;  %1649 = vpow2.f32 %v996_v53  ;;  %1174 = vmatpush.bf16.msrb.mxu1 %v1141_v40  ;;  %v1117_v43 = vpop.f32.mrf.mxu1 }
 0x30d   : > { %v869_v37 = vsub.f32 %v2173_v21, %v2345_v14  ;;  %v992_v51 = vmul.f32 1.442695, %v873_v55  ;;  %1651 = vpow2.f32 %v1000_v31  ;;  %v1139_v21 = vpack.c.bf16 %v2383_v4, %v2378_v30 }
 0x30e   : > { %v1037_v20 = vadd.f32 %v2410_v0, %v1036_v34  ;;  %v1059_v35 = vadd.f32 %v2541_v29, %v1058_v32  ;;  %1161 = vmatpush.bf16.msrb.mxu0 %v1125_v39  ;;  %v2561_v36 = vpop.eup %1641  ;;  %1653 = vpow2.f32 %v956_v33  ;;  %v1138_v10 = vpack.c.bf16 %v1640_v15, %v1638_v19 }
 0x30f   : > { %v2566_v27 = vpop.eup %1643  ;;  %1655 = vpow2.f32 %v960_v25  ;;  %v984_v6 = vmul.f32 1.442695, %v869_v37  ;;  %v2580_v5 = vpack.c.bf16 %v1104_v26, %v1104_v26  ;;  %v2582_v59 = vpack.c.bf16 %v1117_v43, %v1117_v43 }
 0x310   : > { %v1038_v0 = vadd.f32 %v2434_v28, %v1037_v20  ;;  %v1060_v24 = vadd.f32 %v1638_v19, %v1059_v35  ;;  %v2764_v28 = vld [vmem:[#allocation32_spill] sm:$0xff]  ;;  %v2573_v54 = vpop.eup %1645  ;;  %1657 = vpow2.f32 %v988_v42  ;;  %1175 = vmatpush.bf16.msrb.mxu1 %v1139_v21  ;;  %v2766_v50 = vsub.f32 %v2149_v9, %v2345_v14 }
 0x311   : > { %v1123_v41 = vpack.c.bf16 %v2765_v11, %v2764_v28  ;;  %v2578_v2 = vpop.eup %1647  ;;  %1659 = vpow2.f32 %v992_v51  ;;  %v1136_v34 = vpack.c.bf16 %v2541_v29, %v2537_v58  ;;  %v976_v33 = vmul.f32 1.442695, %v865_v63  ;;  %v1241_v35 = vld [vmem:[%s2684_s6] sm:$0xff] }
 0x312   : > { %v1039_v60 = vadd.f32 %v2414_v22, %v1038_v0  ;;  %v1061_v48 = vadd.f32 %v1640_v15, %v1060_v24  ;;  %v2584_v30 = vpop.eup %1649  ;;  %1661 = vpow2.f32 %v964_v62  ;;  %v972_v46 = vmul.f32 1.442695, %v2766_v50  ;;  %v1106_v13 = vpop.f32.mrf.mxu0 }
 0x313   : > { %1162 = vmatpush.bf16.msrb.mxu0 %v1123_v41  ;;  %v2589_v38 = vpop.eup %1651  ;;  %1663 = vpow2.f32 %v968_v1  ;;  %1176 = vmatmul.bf16.vlgmr.msrb.gmra.mxu1 %v2582_v59  ;;  %v1134_v20 = vpack.c.bf16 %v2527_v12, %v2519_v16  ;;  %v1132_v40 = vpack.c.bf16 %v2511_v8, %v2502_v45  ;;  %v2611_v42 = vstv %s1207_s16 }
 0x314   : > { %v2576_v22 = vadd.f32 %v2419_v47, %v1039_v60  ;;  %v1062_v4 = vadd.f32 %v2561_v36, %v1061_v48  ;;  %v1154_v47 = vpack.c.bf16 %v2578_v2, %v2573_v54  ;;  %v2597_v53 = vpop.eup %1653  ;;  %1665 = vpow2.f32 %v980_v49  ;;  %v1119_v14 = vpop.f32.mrf.mxu1  ;;  %v2767_v48 = vld [vmem:[#allocation20_spill] sm:$0xff] }
 0x315   : > { %v1656_v55 = vpop.eup %1655  ;;  %1667 = vpow2.f32 %v984_v6  ;;  %v1152_v58 = vpack.c.bf16 %v2589_v38, %v2584_v30  ;;  %v1130_v17 = vpack.c.bf16 %v2495_v3, %v2483_v44  ;;  %v1242_v62 = vmul.f32 %v1241_v35, %v2611_v42 }
 0x316   : > { %1163 = vmatmul.bf16.vlgmr.msrb.gmra.mxu0 %v2580_v5  ;;  %v1063_v57 = vadd.f32 %v2566_v27, %v1062_v4  ;;  %1194 = vmatpush.bf16.msra.mxu1 %v1154_v47  ;;  %v1658_v9 = vpop.eup %1657  ;;  %1669 = vpow2.f32 %v972_v46  ;;  %v1041_v45 = vrot.slane %v2576_v22, 4  ;;  %v1128_v24 = vpack.c.bf16 %v2471_v7, %v2459_v56  ;;  %v2768_v56 = vld [vmem:[#allocation21_spill] sm:$0xff] }
 0x317   : > { %1181 = vmatpush.bf16.msra.mxu0 %v1138_v10  ;;  %v1660_v29 = vpop.eup %1659  ;;  %1671 = vpow2.f32 %v976_v33  ;;  %1245 = vperm.xlu1 %1544, %v1242_v62   ;;  %v1126_v44 = vpack.c.bf16 %v2449_v18, %v2439_v52  ;;  %v1142_v49 = vpack.c.bf16 %v1656_v55, %v2597_v53  ;;  %v1124_v7 = vpack.c.bf16 %v2768_v56, %v2767_v48 }
 0x318   : > { %v1064_v31 = vadd.f32 %v2597_v53, %v1063_v57  ;;  %v1662_v32 = vpop.eup %1661  ;;  %v1150_v23 = vpack.c.bf16 %v1660_v29, %v1658_v9  ;;  %v1042_v11 = vadd.f32 %v1041_v45, %v2576_v22  ;;  %v1140_v52 = vpack.c.bf16 %v2566_v27, %v2561_v36 }
 0x319   : > { %v1664_v63 = vpop.eup %1663 }
 0x31a   : > { %v1065_v39 = vadd.f32 %v1656_v55, %v1064_v31  ;;  %1195 = vmatpush.bf16.msra.mxu1 %v1152_v58  ;;  %v1666_v19 = vpop.eup %1665  ;;  %v1144_v3 = vpack.c.bf16 %v1664_v63, %v1662_v32  ;;  %v1043_v21 = vrot.slane %v1042_v11, 2 }
 0x31b   : > { %1182 = vmatpush.bf16.msra.mxu0 %v1136_v34  ;;  %v1668_v25 = vpop.eup %1667 }
 0x31c   : > { %v1066_v61 = vadd.f32 %v1662_v32, %v1065_v39  ;;  %v1670_v0 = vpop.eup %1669  ;;  %v1148_v12 = vpack.c.bf16 %v1668_v25, %v1666_v19  ;;  %v1044_v22 = vadd.f32 %v1043_v21, %v1042_v11 }
 0x31d   : > { %v1672_v37 = vpop.eup %1671 }
 0x31e   : > { %v1067_v15 = vadd.f32 %v1664_v63, %v1066_v61  ;;  %1196 = vmatpush.bf16.msra.mxu1 %v1150_v23  ;;  %v1146_v60 = vpack.c.bf16 %v1672_v37, %v1670_v0  ;;  %v1045_v6 = vrot.slane %v1044_v22, 1 }
 0x31f   : > { %1183 = vmatpush.bf16.msra.mxu0 %v1134_v20 }
 0x320   : > { %v1068_v16 = vadd.f32 %v1670_v0, %v1067_v15  ;;  %v1046_v47 = vadd.f32 %v1045_v6, %v1044_v22 }
 0x322   : > { %v1069_v51 = vadd.f32 %v1672_v37, %v1068_v16  ;;  %1197 = vmatpush.bf16.msra.mxu1 %v1148_v12  ;;  %1673 = vrcp.f32 %v1046_v47  ;;  %v1219_v57 = vand.u32 2147483648, %v1046_v47  ;;  %vm1213_vm3 = vweird.f32 %v1046_v47  ;;  %v1250_v16 = vld [vmem:[%s380_s13] sm:$0xff] }
 0x323   : > { %1184 = vmatpush.bf16.msra.mxu0 %v1132_v40 }
 0x324   : > { %v1070_v8 = vadd.f32 %v1666_v19, %v1069_v51 }
 0x326   : > { %v1071_v28 = vadd.f32 %v1668_v25, %v1070_v8  ;;  %1198 = vmatpush.bf16.msra.mxu1 %v1146_v60  ;;  %v1251_v8 = vld [vmem:[%s380_s13 + $0x8] sm:$0xff] }
 0x327   : > { %1185 = vmatpush.bf16.msra.mxu0 %v1130_v17 }
 0x328   : > { %v1072_v41 = vadd.f32 %v1658_v9, %v1071_v28 }
 0x32a   : > { %v1073_v1 = vadd.f32 %v1660_v29, %v1072_v41  ;;  %1199 = vmatpush.bf16.msra.mxu1 %v1144_v3  ;;  %v1220_v29 = vor.u32 1.1754944e-38, %v1219_v57 }
 0x32b   : > { %1186 = vmatpush.bf16.msra.mxu0 %v1128_v24 }
 0x32c   : > { %v1074_v10 = vadd.f32 %v2584_v30, %v1073_v1 }
 0x32e   : > { %v1075_v26 = vadd.f32 %v2589_v38, %v1074_v10  ;;  %1200 = vmatpush.bf16.msra.mxu1 %v1142_v49 }
 0x32f   : > { %1187 = vmatpush.bf16.msra.mxu0 %v1126_v44 }
 0x330   : > { %v1076_v43 = vadd.f32 %v2573_v54, %v1075_v26  ;;  %v1674_v54 = vpop.eup %1673 }
 0x331   : > { %v1209_v53 = vmul.f32 %v1674_v54, %v1046_v47  ;;  %vm1214_vm2 = vweird.f32 %v1674_v54 }
 0x332   : > { %v1077_v18 = vadd.f32 %v2578_v2, %v1076_v43  ;;  %1201 = vmatpush.bf16.msra.mxu1 %v1140_v52  ;;  %vm1215_vm5 = vmor %vm1213_vm3, %vm1214_vm2 }
 0x333   : > { %1188 = vmatpush.bf16.msra.mxu0 %v1124_v7  ;;  %v1210_v27 = vsub.f32 1.0, %v1209_v53 }
 0x334   : > { %v1078_v30 = vrot.slane %v1077_v18, 4 }
 0x335   : > { %1202 = vmatmul.bf16.vlgmr.msra.gmra.mxu1 %v2582_v59  ;;  %v1211_v55 = vmul.f32 %v1674_v54, %v1210_v27 }
 0x336   : > { %1189 = vmatmul.bf16.vlgmr.msra.gmra.mxu0 %v2580_v5  ;;  %v1079_v4 = vadd.f32 %v1078_v30, %v1077_v18  ;;  %v1217_v5 = vand.u32 2147483647, %v1046_v47 }
 0x337   : > { %v1212_v9 = vadd.f32 %v1674_v54, %v1211_v55 }
 0x338   : > { %v1080_v38 = vrot.slane %v1079_v4, 2  ;;  %vm1218_vm6 = vcmp.eq.f32.partialorder %v1217_v5, 8.507059e+37 }
 0x339   : > { %v1216_v20 = vsel %vm1215_vm5, %v1674_v54, %v1212_v9 }
 0x33a   : > { %v1081_v50 = vadd.f32 %v1080_v38, %v1079_v4  ;;  %v1221_v39 = vsel %vm1218_vm6, %v1220_v29, %v1216_v20 }
 0x33b   : > { %v1237_v14 = vmul.f32 %v2611_v42, %v1221_v39 }
 0x33c   : > { %v1082_v46 = vrot.slane %v1081_v50, 1 }
 0x33e   : > { %v1083_v34 = vadd.f32 %v1082_v46, %v1081_v50 }
 0x340   : > { %1675 = vrcp.f32 %v1083_v34  ;;  %v1233_v59 = vand.u32 2147483648, %v1083_v34  ;;  %v1231_v58 = vand.u32 2147483647, %v1083_v34  ;;  %vm1227_vm7 = vweird.f32 %v1083_v34 }
 0x342   : > { %v1234_v13 = vor.u32 1.1754944e-38, %v1233_v59  ;;  %vm1232_vm9 = vcmp.eq.f32.partialorder %v1231_v58, 8.507059e+37 }
 0x346   : > { %v1676_v36 = vpop.eup %1675 }
 0x347   : > { %v1223_v2 = vmul.f32 %v1676_v36, %v1083_v34  ;;  %vm1228_vm4 = vweird.f32 %v1676_v36 }
 0x348   : > { %vm1229_vm8 = vmor %vm1227_vm7, %vm1228_vm4 }
 0x349   : > { %v1224_v33 = vsub.f32 1.0, %v1223_v2 }
 0x34b   : > { %v1225_v31 = vmul.f32 %v1676_v36, %v1224_v33 }
 0x34d   : > { %v1226_v32 = vadd.f32 %v1676_v36, %v1225_v31 }
 0x34f   : > { %v1230_v63 = vsel %vm1229_vm8, %v1676_v36, %v1226_v32 }
 0x350   : > { %v1235_v19 = vsel %vm1232_vm9, %v1234_v13, %v1230_v63 }
 0x351   : > { %v1238_v61 = vmul.f32 %v2611_v42, %v1235_v19 }
 0x389   : > { %v1246_v15 = vpop.permute.xlu1 %1245 }
 0x390   : > { %v1177_v25 = vpop.f32.mrf.mxu1 }
 0x393   : > { %v1164_v23 = vpop.f32.mrf.mxu0 }
 0x394   : > { %v1178_v40 = vadd.f32 %v1177_v25, %v1164_v23 }
 0x396   : > { %v1239_v0 = vmul.f32 %v1237_v14, %v1178_v40 }
 0x398   : > { %v1248_v12 = vadd.f32 %v1246_v15, %v1239_v0  ;;  %v1179_v17 = vpop.f32.mrf.mxu1 }
 0x39a   : > { %v1252_v37 = vadd.f32 %v1250_v16, %v1248_v12 }
 0x39b   : > { %v1166_v35 = vpop.f32.mrf.mxu0 }
 0x39c   : > { %1254 = vst [vmem:[%s423_s17] sm:$0xff] %v1252_v37 }
 0x3b2   : > { %v1203_v51 = vpop.f32.mrf.mxu1 }
 0x3b3   : > { %v1190_v62 = vpop.f32.mrf.mxu0 }
 0x3b4   : > { %v1204_v45 = vadd.f32 %v1203_v51, %v1190_v62 }
 0x3b6   : > { %v1240_v42 = vmul.f32 %v1238_v61, %v1204_v45 }
 0x3b8   : > { %v1249_v60 = vadd.f32 %v1246_v15, %v1240_v42 }
 0x3ba   : > { %v1253_v28 = vadd.f32 %v1251_v8, %v1249_v60  ;;  %v1205_v11 = vpop.f32.mrf.mxu1 }
 0x3bb   : > { %v1192_v24 = vpop.f32.mrf.mxu0 }
 0x3bc   : > { %1255 = vst [vmem:[%s423_s17 + $0x8] sm:$0xff] %v1253_v28 }
 0x3bd   : > { %1794 = shalt.err (!%p1791_p13)
}
 0x3be   : > { %1476 = dma.vmem_to_hbm [thread:$0]  (%p1959_p9), %s1273_s22, 256, %s1275_s29, %s1257_s1  }
 0x3bf PF: > { %s2769_s9 = sld [smem:[#allocation13_spill]]  ;;  %p1489_p0 = pnand %p1408_p12, %p1966_p11 }
 0x3c0   : > { %s2771_s25 = sld [smem:[#allocation16_spill]] }
 0x3c1   : > { %p1490_p1 = pneg %p1489_p0 }
 0x3c5   : > { %s1286_s16 = sand.u32 1, %s2769_s9  }
 0x3c6   : > { %s1287_s27 = scalar_lea.sflag [#allocation5], %s1286_s16 }
 0x3c7   : > { %1828 = dma.done.wait (%p1490_p1), %s1287_s27, 256  }
 0x3c8   : > { %1830 = vsyncadd (%p1490_p1), %s1287_s27, 4294967040  ;;  %s28_s12 = sadd.s32 1, %s2771_s25   ;;  %s2772_s28 = sld [smem:[#allocation14_spill]] }
 0x3c9   : > { %p25_p2 = scmp.ge.s32.totalorder %s28_s12, 4   ;;  %s2773_s9 = sld [smem:[#allocation18_spill]] }
 0x3ca   : > { %s2774_s10 = sld [smem:[#allocation15_spill]]  ;;  %s2776_s29 = smov %s1837_s30 }
 0x3cb   : > { %s2775_s11 = sld [smem:[#allocation17_spill]]  ;;  %27 = sbr.rel (!%p25_p2) target bundleno = 11 (0xb), region = 121 }
 0x3ce   : > { %s2777_s30 = smov %s2772_s28 }
 0x3d0   :  { %1293 = vsyncpa [#allocation4], 1 }
 0x3d1   :  { %1295 = vsyncpa [#allocation4 + $0x1], 1 }
 0x3d2   :  { %1296 = vsyncpa [#allocation7], 1 }
 0x3d3   :  { %1298 = vsyncpa [#allocation7 + $0x1], 1 }
 0x3d4   :  { %1299 = vsyncpa [#allocation5], 1 }
 0x3d5   :  { %1301 = vsyncpa [#allocation5 + $0x1], 1 }

</bundles_post_ra>
